<compile_context>
chip_gen: v7x
topology: tpu7x:2x2x1
jax: 0.10.0
libtpu: 0.0.40
codegen_flags: <defaults>
</compile_context>

<pallas_src>
import functools
import math

import jax
import jax.numpy as jnp
from jax.experimental import pallas as pl
from jax.experimental.pallas import tpu as pltpu


# ----------------------------------------------------------------------------
# Pallas kernel: one batch element per grid step.  Fused:
#   QK/V projection -> per-head attention (+ additive mask) -> output proj
#   -> residual + LayerNorm1 -> FFN -> residual + LayerNorm2.
# ----------------------------------------------------------------------------
def _encoder_layer_kernel(src_ref, pos_ref, mask_ref,
                          wqk_ref, bqk_ref, wv_ref, bv_ref,
                          wo3_ref, bo_ref,
                          g1_ref, be1_ref,
                          w1_ref, b1_ref, w2_ref, b2_ref,
                          g2_ref, be2_ref,
                          out_ref, *, num_heads):
    f32 = jnp.float32
    bf16 = jnp.bfloat16

    src = src_ref[...]                          # (L, E) f32
    pos = pos_ref[...]                          # (L, E) f32
    mask = mask_ref[...]                        # (L, L) additive float mask

    L, E = src.shape
    hd = E // num_heads

    qk_in = (src + pos).astype(bf16)            # q = k input (pos-embedded)
    src_b = src.astype(bf16)                    # v input

    # Fused Q|K projection (1/sqrt(hd) pre-folded into Wq/bq by the wrapper).
    qk = jnp.dot(qk_in, wqk_ref[...], preferred_element_type=f32) + bqk_ref[...]
    v = jnp.dot(src_b, wv_ref[...], preferred_element_type=f32) + bv_ref[...]
    q = qk[:, :E]
    k = qk[:, E:]

    # Per-head attention; each head's output is immediately folded into the
    # output projection (no concatenate, minimal vreg pressure).
    attn = jnp.zeros((L, E), f32)
    for h in range(num_heads):
        qh = q[:, h * hd:(h + 1) * hd].astype(bf16)
        kh = k[:, h * hd:(h + 1) * hd].astype(bf16)
        vh = v[:, h * hd:(h + 1) * hd].astype(bf16)
        # A @ B^T via dot_general (no materialized transpose).
        s = jax.lax.dot_general(qh, kh, (((1,), (1,)), ((), ())),
                                preferred_element_type=f32) + mask    # (L, L)
        s = s - jnp.max(s, axis=-1, keepdims=True)
        p = jnp.exp(s)
        p = p * pl.reciprocal(jnp.sum(p, axis=-1, keepdims=True), approx=True)
        head = jnp.dot(p.astype(bf16), vh, preferred_element_type=f32)  # (L, hd)
        attn = attn + jnp.dot(head.astype(bf16), wo3_ref[h],
                              preferred_element_type=f32)               # (L, E)
    attn = attn + bo_ref[...]

    # residual + LayerNorm1 (dropout1 identity in eval mode); one-pass stats.
    x = src + attn
    mu = jnp.mean(x, axis=-1, keepdims=True)
    ms = jnp.mean(x * x, axis=-1, keepdims=True)
    inv = jax.lax.rsqrt(ms - mu * mu + 1e-5)
    x = (x - mu) * inv * g1_ref[...] + be1_ref[...]

    # FFN: linear2(relu(linear1(x)))  (inner dropout identity).
    h1 = jnp.dot(x.astype(bf16), w1_ref[...], preferred_element_type=f32) + b1_ref[...]
    h1 = jnp.maximum(h1, 0.0)
    ff = jnp.dot(h1.astype(bf16), w2_ref[...], preferred_element_type=f32) + b2_ref[...]

    # residual + LayerNorm2 (dropout3 identity in eval mode).
    y = x + ff
    mu2 = jnp.mean(y, axis=-1, keepdims=True)
    ms2 = jnp.mean(y * y, axis=-1, keepdims=True)
    inv2 = jax.lax.rsqrt(ms2 - mu2 * mu2 + 1e-5)
    out_ref[...] = (y - mu2) * inv2 * g2_ref[...] + be2_ref[...]


# ----------------------------------------------------------------------------
# Wrapper: batch-first (N, L, E) in/out; grid over batch (parallel).
# ----------------------------------------------------------------------------
def transformer_encoder_layer(src, pos, attn_mask, params, num_heads):
    N, L, E = src.shape
    dff = params["w1"].shape[1]
    hd = E // num_heads
    bf16 = jnp.bfloat16

    # One-time weight prep (outside the kernel): fold score scale into Wq/bq,
    # fuse Q|K weights, group Wo rows per head, cast matmul weights to bf16.
    scale = 1.0 / math.sqrt(hd)
    wqk = jnp.concatenate([params["wq"] * scale, params["wk"]], axis=1).astype(bf16)
    bqk = jnp.concatenate([params["bq"] * scale, params["bk"]], axis=1)   # f32
    wv = params["wv"].astype(bf16)
    wo3 = params["wo"].reshape(num_heads, hd, E).astype(bf16)
    w1 = params["w1"].astype(bf16)
    w2 = params["w2"].astype(bf16)

    def full(shape):
        return pl.BlockSpec(shape, lambda b: (0,) * len(shape))

    per_batch = pl.BlockSpec((None, L, E), lambda b: (b, 0, 0))

    flops_per_batch = (2 * L * E * 2 * E        # fused Q|K projection
                       + 2 * L * E * E          # V projection
                       + 2 * L * L * E          # scores
                       + 2 * L * L * E          # P @ V
                       + 2 * L * E * E          # output projection
                       + 4 * L * E * dff)       # FFN
    bytes_accessed = (3 * N * L * E * 4                       # src, pos, out
                      + L * L * 4                             # mask
                      + (2 * E * E + 2 * E * E + 2 * E * dff) * 2   # bf16 weights
                      + (2 * E + E + E + dff + 5 * E) * 4)          # f32 biases / LN params
    cost = pl.CostEstimate(flops=N * flops_per_batch,
                           transcendentals=N * num_heads * L * L,
                           bytes_accessed=bytes_accessed)

    kernel = functools.partial(_encoder_layer_kernel, num_heads=num_heads)

    return pl.pallas_call(
        kernel,
        out_shape=jax.ShapeDtypeStruct((N, L, E), jnp.float32),
        grid_spec=pltpu.PrefetchScalarGridSpec(
            num_scalar_prefetch=0,
            grid=(N,),
            in_specs=[
                per_batch,                         # src
                per_batch,                         # pos
                full((L, L)),                      # additive mask
                full((E, 2 * E)), full((1, 2 * E)),   # fused Wq|Wk, bq|bk
                full((E, E)), full((1, E)),        # Wv, bv
                full((num_heads, hd, E)), full((1, E)),   # Wo (per-head rows), bo
                full((1, E)), full((1, E)),        # norm1 gamma, beta
                full((E, dff)), full((1, dff)),    # W1, b1
                full((dff, E)), full((1, E)),      # W2, b2
                full((1, E)), full((1, E)),        # norm2 gamma, beta
            ],
            out_specs=pl.BlockSpec((None, L, E), lambda b: (b, 0, 0)),
        ),
        compiler_params=pltpu.CompilerParams(
            dimension_semantics=("parallel",),
            vmem_limit_bytes=32 * 1024 * 1024,
        ),
        cost_estimate=cost,
    )(src, pos, attn_mask,
      wqk, bqk, wv, params["bv"], wo3, params["bo"],
      params["g1"], params["be1"],
      w1, params["b1"], w2, params["b2"],
      params["g2"], params["be2"])


# ----------------------------------------------------------------------------
# Pure-JAX f32 reference (same layer semantics, batch-first).
# ----------------------------------------------------------------------------
def _layernorm(x, g, b, eps=1e-5):
    mu = jnp.mean(x, axis=-1, keepdims=True)
    var = jnp.mean((x - mu) ** 2, axis=-1, keepdims=True)
    return (x - mu) / jnp.sqrt(var + eps) * g + b


def reference_forward(src, pos, attn_mask, params, num_heads):
    N, L, E = src.shape
    hd = E // num_heads
    qk = src + pos
    q = qk @ params["wq"] + params["bq"][0]
    k = qk @ params["wk"] + params["bk"][0]
    v = src @ params["wv"] + params["bv"][0]

    def split(x):  # (N, L, E) -> (N, H, L, hd)
        return x.reshape(N, L, num_heads, hd).transpose(0, 2, 1, 3)

    qh, kh, vh = split(q), split(k), split(v)
    scores = jnp.einsum("nhld,nhmd->nhlm", qh, kh) / math.sqrt(hd)
    scores = scores + attn_mask[None, None]
    p = jax.nn.softmax(scores, axis=-1)
    attn = jnp.einsum("nhlm,nhmd->nhld", p, vh)
    attn = attn.transpose(0, 2, 1, 3).reshape(N, L, E)
    attn = attn @ params["wo"] + params["bo"][0]

    x = _layernorm(src + attn, params["g1"][0], params["be1"][0])
    ff = jnp.maximum(x @ params["w1"] + params["b1"][0], 0.0) @ params["w2"] + params["b2"][0]
    return _layernorm(x + ff, params["g2"][0], params["be2"][0])


# ----------------------------------------------------------------------------
if __name__ == "__main__":
    N, L, E = 2, 16, 32         # batch, tokens (sum of multi-scale HW), d_model
    H = 4                       # num_heads
    DFF = 64                    # d_ffn

    key = jax.random.PRNGKey(0)
    keys = jax.random.split(key, 16)

    def w(k, shape, scale=0.02):
        return (scale * jax.random.normal(k, shape)).astype(jnp.float32)

    params = {
        "wq": w(keys[0], (E, E)), "bq": w(keys[1], (1, E)),
        "wk": w(keys[2], (E, E)), "bk": w(keys[3], (1, E)),
        "wv": w(keys[4], (E, E)), "bv": w(keys[5], (1, E)),
        "wo": w(keys[6], (E, E)), "bo": w(keys[7], (1, E)),
        "g1": jnp.ones((1, E), jnp.float32), "be1": jnp.zeros((1, E), jnp.float32),
        "w1": w(keys[8], (E, DFF)), "b1": w(keys[9], (1, DFF)),
        "w2": w(keys[10], (DFF, E)), "b2": w(keys[11], (1, E)),
        "g2": jnp.ones((1, E), jnp.float32), "be2": jnp.zeros((1, E), jnp.float32),
    }

    src = jax.random.normal(keys[12], (N, L, E), jnp.float32)
    pos = jax.random.normal(keys[13], (N, L, E), jnp.float32) * 0.1
    # 2-D additive float attention mask (L, L).
    attn_mask = (jax.random.normal(keys[14], (L, L), jnp.float32) * 0.05).astype(jnp.float32)

    out = transformer_encoder_layer(src, pos, attn_mask, params, num_heads=H)
    out = jax.block_until_ready(out)

    ref = reference_forward(src, pos, attn_mask, params, num_heads=H)
    assert out.shape == (N, L, E)
    err = float(jnp.max(jnp.abs(out - ref)))
    # bf16 MXU operands with f32 accumulation + approx reciprocal: tolerance
    # loosened vs. the pure-f32 path (per review guidance).
    assert err < 3e-2, err

    print("KERNEL_OK")
</pallas_src>

<mosaic_0001>
module attributes {stable_mosaic.version = 11 : i64} {
  func.func @_encoder_layer_kernel(%arg0: i32, %arg1: memref<1x16x32xf32, #tpu.memory_space<vmem>>, %arg2: memref<1x16x32xf32, #tpu.memory_space<vmem>>, %arg3: memref<16x16xf32, #tpu.memory_space<vmem>>, %arg4: memref<32x64xbf16, #tpu.memory_space<vmem>>, %arg5: memref<1x64xf32, #tpu.memory_space<vmem>>, %arg6: memref<32x32xbf16, #tpu.memory_space<vmem>>, %arg7: memref<1x32xf32, #tpu.memory_space<vmem>>, %arg8: memref<4x8x32xbf16, #tpu.memory_space<vmem>>, %arg9: memref<1x32xf32, #tpu.memory_space<vmem>>, %arg10: memref<1x32xf32, #tpu.memory_space<vmem>>, %arg11: memref<1x32xf32, #tpu.memory_space<vmem>>, %arg12: memref<32x64xbf16, #tpu.memory_space<vmem>>, %arg13: memref<1x64xf32, #tpu.memory_space<vmem>>, %arg14: memref<64x32xbf16, #tpu.memory_space<vmem>>, %arg15: memref<1x32xf32, #tpu.memory_space<vmem>>, %arg16: memref<1x32xf32, #tpu.memory_space<vmem>>, %arg17: memref<1x32xf32, #tpu.memory_space<vmem>>, %arg18: memref<1x16x32xf32, #tpu.memory_space<vmem>>) attributes {dimension_semantics = [#tpu.dimension_semantics<parallel>], iteration_bounds = array<i64: 2>, scalar_prefetch = 0 : i64, scratch_operands = 0 : i64, tpu.core_type = #tpu.core_type<tc>, window_params = [{transform_indices = @transform_0, window_bounds = array<i64: 1, 16, 32>}, {transform_indices = @transform_1, window_bounds = array<i64: 1, 16, 32>}, {pipeline_mode = #tpu.pipeline_mode<synchronous>, transform_indices = @transform_2, window_bounds = array<i64: 16, 16>}, {pipeline_mode = #tpu.pipeline_mode<synchronous>, transform_indices = @transform_3, window_bounds = array<i64: 32, 64>}, {pipeline_mode = #tpu.pipeline_mode<synchronous>, transform_indices = @transform_4, window_bounds = array<i64: 1, 64>}, {pipeline_mode = #tpu.pipeline_mode<synchronous>, transform_indices = @transform_5, window_bounds = array<i64: 32, 32>}, {pipeline_mode = #tpu.pipeline_mode<synchronous>, transform_indices = @transform_6, window_bounds = array<i64: 1, 32>}, {pipeline_mode = #tpu.pipeline_mode<synchronous>, transform_indices = @transform_7, window_bounds = array<i64: 4, 8, 32>}, {pipeline_mode = #tpu.pipeline_mode<synchronous>, transform_indices = @transform_8, window_bounds = array<i64: 1, 32>}, {pipeline_mode = #tpu.pipeline_mode<synchronous>, transform_indices = @transform_9, window_bounds = array<i64: 1, 32>}, {pipeline_mode = #tpu.pipeline_mode<synchronous>, transform_indices = @transform_10, window_bounds = array<i64: 1, 32>}, {pipeline_mode = #tpu.pipeline_mode<synchronous>, transform_indices = @transform_11, window_bounds = array<i64: 32, 64>}, {pipeline_mode = #tpu.pipeline_mode<synchronous>, transform_indices = @transform_12, window_bounds = array<i64: 1, 64>}, {pipeline_mode = #tpu.pipeline_mode<synchronous>, transform_indices = @transform_13, window_bounds = array<i64: 64, 32>}, {pipeline_mode = #tpu.pipeline_mode<synchronous>, transform_indices = @transform_14, window_bounds = array<i64: 1, 32>}, {pipeline_mode = #tpu.pipeline_mode<synchronous>, transform_indices = @transform_15, window_bounds = array<i64: 1, 32>}, {pipeline_mode = #tpu.pipeline_mode<synchronous>, transform_indices = @transform_16, window_bounds = array<i64: 1, 32>}, {transform_indices = @transform_17, window_bounds = array<i64: 1, 16, 32>}]} {
    %c0 = arith.constant 0 : index
    %c0_0 = arith.constant 0 : index
    %c0_1 = arith.constant 0 : index
    %0 = vector.load %arg1[%c0, %c0_0, %c0_1] : memref<1x16x32xf32, #tpu.memory_space<vmem>>, vector<1x16x32xf32>
    %1 = vector.shape_cast %0 : vector<1x16x32xf32> to vector<16x32xf32>
    %c0_2 = arith.constant 0 : index
    %c0_3 = arith.constant 0 : index
    %c0_4 = arith.constant 0 : index
    %2 = vector.load %arg2[%c0_2, %c0_3, %c0_4] : memref<1x16x32xf32, #tpu.memory_space<vmem>>, vector<1x16x32xf32>
    %3 = vector.shape_cast %2 : vector<1x16x32xf32> to vector<16x32xf32>
    %c0_5 = arith.constant 0 : index
    %c0_6 = arith.constant 0 : index
    %4 = vector.load %arg3[%c0_5, %c0_6] : memref<16x16xf32, #tpu.memory_space<vmem>>, vector<16x16xf32>
    %5 = arith.addf %1, %3 : vector<16x32xf32>
    %6 = arith.truncf %5 : vector<16x32xf32> to vector<16x32xbf16>
    %7 = arith.truncf %1 : vector<16x32xf32> to vector<16x32xbf16>
    %c0_7 = arith.constant 0 : index
    %c0_8 = arith.constant 0 : index
    %8 = vector.load %arg4[%c0_7, %c0_8] : memref<32x64xbf16, #tpu.memory_space<vmem>>, vector<32x64xbf16>
    %cst = arith.constant dense<0.000000e+00> : vector<16x64xf32>
    %9 = tpu.matmul %6, %8, %cst {dimension_numbers = #tpu.dot_dimension_numbers<[1], [0], [0], [1], [0, 0, 1, 1], [], []>} : vector<16x32xbf16>, vector<32x64xbf16>, vector<16x64xf32> -> vector<16x64xf32>
    %c0_9 = arith.constant 0 : index
    %c0_10 = arith.constant 0 : index
    %10 = vector.load %arg5[%c0_9, %c0_10] : memref<1x64xf32, #tpu.memory_space<vmem>>, vector<1x64xf32>
    %11 = vector.broadcast %10 : vector<1x64xf32> to vector<16x64xf32>
    %12 = arith.addf %9, %11 : vector<16x64xf32>
    %c0_11 = arith.constant 0 : index
    %c0_12 = arith.constant 0 : index
    %13 = vector.load %arg6[%c0_11, %c0_12] : memref<32x32xbf16, #tpu.memory_space<vmem>>, vector<32x32xbf16>
    %cst_13 = arith.constant dense<0.000000e+00> : vector<16x32xf32>
    %14 = tpu.matmul %7, %13, %cst_13 {dimension_numbers = #tpu.dot_dimension_numbers<[1], [0], [0], [1], [0, 0, 1, 1], [], []>} : vector<16x32xbf16>, vector<32x32xbf16>, vector<16x32xf32> -> vector<16x32xf32>
    %c0_14 = arith.constant 0 : index
    %c0_15 = arith.constant 0 : index
    %15 = vector.load %arg7[%c0_14, %c0_15] : memref<1x32xf32, #tpu.memory_space<vmem>>, vector<1x32xf32>
    %16 = vector.broadcast %15 : vector<1x32xf32> to vector<16x32xf32>
    %17 = arith.addf %14, %16 : vector<16x32xf32>
    %18 = vector.extract_strided_slice %12 {offsets = [0, 0], sizes = [16, 32], strides = [1, 1]} : vector<16x64xf32> to vector<16x32xf32>
    %19 = vector.extract_strided_slice %12 {offsets = [0, 32], sizes = [16, 32], strides = [1, 1]} : vector<16x64xf32> to vector<16x32xf32>
    %cst_16 = arith.constant 0.000000e+00 : f32
    %20 = vector.broadcast %cst_16 : f32 to vector<16x32xf32>
    %21 = vector.extract_strided_slice %18 {offsets = [0, 0], sizes = [16, 8], strides = [1, 1]} : vector<16x32xf32> to vector<16x8xf32>
    %22 = arith.truncf %21 : vector<16x8xf32> to vector<16x8xbf16>
    %23 = vector.extract_strided_slice %19 {offsets = [0, 0], sizes = [16, 8], strides = [1, 1]} : vector<16x32xf32> to vector<16x8xf32>
    %24 = arith.truncf %23 : vector<16x8xf32> to vector<16x8xbf16>
    %25 = vector.extract_strided_slice %17 {offsets = [0, 0], sizes = [16, 8], strides = [1, 1]} : vector<16x32xf32> to vector<16x8xf32>
    %26 = arith.truncf %25 : vector<16x8xf32> to vector<16x8xbf16>
    %cst_17 = arith.constant dense<0.000000e+00> : vector<16x16xf32>
    %27 = tpu.matmul %22, %24, %cst_17 {dimension_numbers = #tpu.dot_dimension_numbers<[1], [1], [0], [0], [0, 0, 1, 0], [], []>} : vector<16x8xbf16>, vector<16x8xbf16>, vector<16x16xf32> -> vector<16x16xf32>
    %28 = arith.addf %27, %4 : vector<16x16xf32>
    %cst_18 = arith.constant dense<0xFF800000> : vector<16xf32>
    %29 = vector.multi_reduction <maximumf>, %28, %cst_18 [1] : vector<16x16xf32> to vector<16xf32>
    %30 = vector.shape_cast %29 : vector<16xf32> to vector<16x1xf32>
    %31 = vector.broadcast %30 : vector<16x1xf32> to vector<16x16xf32>
    %32 = arith.subf %28, %31 : vector<16x16xf32>
    %33 = math.exp %32 : vector<16x16xf32>
    %cst_19 = arith.constant dense<0.000000e+00> : vector<16xf32>
    %34 = vector.multi_reduction <add>, %33, %cst_19 [1] : vector<16x16xf32> to vector<16xf32>
    %35 = vector.shape_cast %34 : vector<16xf32> to vector<16x1xf32>
    %36 = tpu.reciprocal %35 {approx = true} : vector<16x1xf32> -> vector<16x1xf32>
    %37 = vector.broadcast %36 : vector<16x1xf32> to vector<16x16xf32>
    %38 = arith.mulf %33, %37 : vector<16x16xf32>
    %39 = arith.truncf %38 : vector<16x16xf32> to vector<16x16xbf16>
    %cst_20 = arith.constant dense<0.000000e+00> : vector<16x8xf32>
    %40 = tpu.matmul %39, %26, %cst_20 {dimension_numbers = #tpu.dot_dimension_numbers<[1], [0], [0], [1], [0, 0, 1, 1], [], []>} : vector<16x16xbf16>, vector<16x8xbf16>, vector<16x8xf32> -> vector<16x8xf32>
    %41 = arith.truncf %40 : vector<16x8xf32> to vector<16x8xbf16>
    %c0_21 = arith.constant 0 : index
    %c0_22 = arith.constant 0 : index
    %c0_23 = arith.constant 0 : index
    %42 = vector.load %arg8[%c0_21, %c0_22, %c0_23] : memref<4x8x32xbf16, #tpu.memory_space<vmem>>, vector<1x8x32xbf16>
    %43 = vector.shape_cast %42 : vector<1x8x32xbf16> to vector<8x32xbf16>
    %cst_24 = arith.constant dense<0.000000e+00> : vector<16x32xf32>
    %44 = tpu.matmul %41, %43, %cst_24 {dimension_numbers = #tpu.dot_dimension_numbers<[1], [0], [0], [1], [0, 0, 1, 1], [], []>} : vector<16x8xbf16>, vector<8x32xbf16>, vector<16x32xf32> -> vector<16x32xf32>
    %45 = arith.addf %20, %44 : vector<16x32xf32>
    %46 = vector.extract_strided_slice %18 {offsets = [0, 8], sizes = [16, 8], strides = [1, 1]} : vector<16x32xf32> to vector<16x8xf32>
    %47 = arith.truncf %46 : vector<16x8xf32> to vector<16x8xbf16>
    %48 = vector.extract_strided_slice %19 {offsets = [0, 8], sizes = [16, 8], strides = [1, 1]} : vector<16x32xf32> to vector<16x8xf32>
    %49 = arith.truncf %48 : vector<16x8xf32> to vector<16x8xbf16>
    %50 = vector.extract_strided_slice %17 {offsets = [0, 8], sizes = [16, 8], strides = [1, 1]} : vector<16x32xf32> to vector<16x8xf32>
    %51 = arith.truncf %50 : vector<16x8xf32> to vector<16x8xbf16>
    %cst_25 = arith.constant dense<0.000000e+00> : vector<16x16xf32>
    %52 = tpu.matmul %47, %49, %cst_25 {dimension_numbers = #tpu.dot_dimension_numbers<[1], [1], [0], [0], [0, 0, 1, 0], [], []>} : vector<16x8xbf16>, vector<16x8xbf16>, vector<16x16xf32> -> vector<16x16xf32>
    %53 = arith.addf %52, %4 : vector<16x16xf32>
    %cst_26 = arith.constant dense<0xFF800000> : vector<16xf32>
    %54 = vector.multi_reduction <maximumf>, %53, %cst_26 [1] : vector<16x16xf32> to vector<16xf32>
    %55 = vector.shape_cast %54 : vector<16xf32> to vector<16x1xf32>
    %56 = vector.broadcast %55 : vector<16x1xf32> to vector<16x16xf32>
    %57 = arith.subf %53, %56 : vector<16x16xf32>
    %58 = math.exp %57 : vector<16x16xf32>
    %cst_27 = arith.constant dense<0.000000e+00> : vector<16xf32>
    %59 = vector.multi_reduction <add>, %58, %cst_27 [1] : vector<16x16xf32> to vector<16xf32>
    %60 = vector.shape_cast %59 : vector<16xf32> to vector<16x1xf32>
    %61 = tpu.reciprocal %60 {approx = true} : vector<16x1xf32> -> vector<16x1xf32>
    %62 = vector.broadcast %61 : vector<16x1xf32> to vector<16x16xf32>
    %63 = arith.mulf %58, %62 : vector<16x16xf32>
    %64 = arith.truncf %63 : vector<16x16xf32> to vector<16x16xbf16>
    %cst_28 = arith.constant dense<0.000000e+00> : vector<16x8xf32>
    %65 = tpu.matmul %64, %51, %cst_28 {dimension_numbers = #tpu.dot_dimension_numbers<[1], [0], [0], [1], [0, 0, 1, 1], [], []>} : vector<16x16xbf16>, vector<16x8xbf16>, vector<16x8xf32> -> vector<16x8xf32>
    %66 = arith.truncf %65 : vector<16x8xf32> to vector<16x8xbf16>
    %c1 = arith.constant 1 : index
    %c0_29 = arith.constant 0 : index
    %c0_30 = arith.constant 0 : index
    %67 = vector.load %arg8[%c1, %c0_29, %c0_30] : memref<4x8x32xbf16, #tpu.memory_space<vmem>>, vector<1x8x32xbf16>
    %68 = vector.shape_cast %67 : vector<1x8x32xbf16> to vector<8x32xbf16>
    %cst_31 = arith.constant dense<0.000000e+00> : vector<16x32xf32>
    %69 = tpu.matmul %66, %68, %cst_31 {dimension_numbers = #tpu.dot_dimension_numbers<[1], [0], [0], [1], [0, 0, 1, 1], [], []>} : vector<16x8xbf16>, vector<8x32xbf16>, vector<16x32xf32> -> vector<16x32xf32>
    %70 = arith.addf %45, %69 : vector<16x32xf32>
    %71 = vector.extract_strided_slice %18 {offsets = [0, 16], sizes = [16, 8], strides = [1, 1]} : vector<16x32xf32> to vector<16x8xf32>
    %72 = arith.truncf %71 : vector<16x8xf32> to vector<16x8xbf16>
    %73 = vector.extract_strided_slice %19 {offsets = [0, 16], sizes = [16, 8], strides = [1, 1]} : vector<16x32xf32> to vector<16x8xf32>
    %74 = arith.truncf %73 : vector<16x8xf32> to vector<16x8xbf16>
    %75 = vector.extract_strided_slice %17 {offsets = [0, 16], sizes = [16, 8], strides = [1, 1]} : vector<16x32xf32> to vector<16x8xf32>
    %76 = arith.truncf %75 : vector<16x8xf32> to vector<16x8xbf16>
    %cst_32 = arith.constant dense<0.000000e+00> : vector<16x16xf32>
    %77 = tpu.matmul %72, %74, %cst_32 {dimension_numbers = #tpu.dot_dimension_numbers<[1], [1], [0], [0], [0, 0, 1, 0], [], []>} : vector<16x8xbf16>, vector<16x8xbf16>, vector<16x16xf32> -> vector<16x16xf32>
    %78 = arith.addf %77, %4 : vector<16x16xf32>
    %cst_33 = arith.constant dense<0xFF800000> : vector<16xf32>
    %79 = vector.multi_reduction <maximumf>, %78, %cst_33 [1] : vector<16x16xf32> to vector<16xf32>
    %80 = vector.shape_cast %79 : vector<16xf32> to vector<16x1xf32>
    %81 = vector.broadcast %80 : vector<16x1xf32> to vector<16x16xf32>
    %82 = arith.subf %78, %81 : vector<16x16xf32>
    %83 = math.exp %82 : vector<16x16xf32>
    %cst_34 = arith.constant dense<0.000000e+00> : vector<16xf32>
    %84 = vector.multi_reduction <add>, %83, %cst_34 [1] : vector<16x16xf32> to vector<16xf32>
    %85 = vector.shape_cast %84 : vector<16xf32> to vector<16x1xf32>
    %86 = tpu.reciprocal %85 {approx = true} : vector<16x1xf32> -> vector<16x1xf32>
    %87 = vector.broadcast %86 : vector<16x1xf32> to vector<16x16xf32>
    %88 = arith.mulf %83, %87 : vector<16x16xf32>
    %89 = arith.truncf %88 : vector<16x16xf32> to vector<16x16xbf16>
    %cst_35 = arith.constant dense<0.000000e+00> : vector<16x8xf32>
    %90 = tpu.matmul %89, %76, %cst_35 {dimension_numbers = #tpu.dot_dimension_numbers<[1], [0], [0], [1], [0, 0, 1, 1], [], []>} : vector<16x16xbf16>, vector<16x8xbf16>, vector<16x8xf32> -> vector<16x8xf32>
    %91 = arith.truncf %90 : vector<16x8xf32> to vector<16x8xbf16>
    %c2 = arith.constant 2 : index
    %c0_36 = arith.constant 0 : index
    %c0_37 = arith.constant 0 : index
    %92 = vector.load %arg8[%c2, %c0_36, %c0_37] : memref<4x8x32xbf16, #tpu.memory_space<vmem>>, vector<1x8x32xbf16>
    %93 = vector.shape_cast %92 : vector<1x8x32xbf16> to vector<8x32xbf16>
    %cst_38 = arith.constant dense<0.000000e+00> : vector<16x32xf32>
    %94 = tpu.matmul %91, %93, %cst_38 {dimension_numbers = #tpu.dot_dimension_numbers<[1], [0], [0], [1], [0, 0, 1, 1], [], []>} : vector<16x8xbf16>, vector<8x32xbf16>, vector<16x32xf32> -> vector<16x32xf32>
    %95 = arith.addf %70, %94 : vector<16x32xf32>
    %96 = vector.extract_strided_slice %18 {offsets = [0, 24], sizes = [16, 8], strides = [1, 1]} : vector<16x32xf32> to vector<16x8xf32>
    %97 = arith.truncf %96 : vector<16x8xf32> to vector<16x8xbf16>
    %98 = vector.extract_strided_slice %19 {offsets = [0, 24], sizes = [16, 8], strides = [1, 1]} : vector<16x32xf32> to vector<16x8xf32>
    %99 = arith.truncf %98 : vector<16x8xf32> to vector<16x8xbf16>
    %100 = vector.extract_strided_slice %17 {offsets = [0, 24], sizes = [16, 8], strides = [1, 1]} : vector<16x32xf32> to vector<16x8xf32>
    %101 = arith.truncf %100 : vector<16x8xf32> to vector<16x8xbf16>
    %cst_39 = arith.constant dense<0.000000e+00> : vector<16x16xf32>
    %102 = tpu.matmul %97, %99, %cst_39 {dimension_numbers = #tpu.dot_dimension_numbers<[1], [1], [0], [0], [0, 0, 1, 0], [], []>} : vector<16x8xbf16>, vector<16x8xbf16>, vector<16x16xf32> -> vector<16x16xf32>
    %103 = arith.addf %102, %4 : vector<16x16xf32>
    %cst_40 = arith.constant dense<0xFF800000> : vector<16xf32>
    %104 = vector.multi_reduction <maximumf>, %103, %cst_40 [1] : vector<16x16xf32> to vector<16xf32>
    %105 = vector.shape_cast %104 : vector<16xf32> to vector<16x1xf32>
    %106 = vector.broadcast %105 : vector<16x1xf32> to vector<16x16xf32>
    %107 = arith.subf %103, %106 : vector<16x16xf32>
    %108 = math.exp %107 : vector<16x16xf32>
    %cst_41 = arith.constant dense<0.000000e+00> : vector<16xf32>
    %109 = vector.multi_reduction <add>, %108, %cst_41 [1] : vector<16x16xf32> to vector<16xf32>
    %110 = vector.shape_cast %109 : vector<16xf32> to vector<16x1xf32>
    %111 = tpu.reciprocal %110 {approx = true} : vector<16x1xf32> -> vector<16x1xf32>
    %112 = vector.broadcast %111 : vector<16x1xf32> to vector<16x16xf32>
    %113 = arith.mulf %108, %112 : vector<16x16xf32>
    %114 = arith.truncf %113 : vector<16x16xf32> to vector<16x16xbf16>
    %cst_42 = arith.constant dense<0.000000e+00> : vector<16x8xf32>
    %115 = tpu.matmul %114, %101, %cst_42 {dimension_numbers = #tpu.dot_dimension_numbers<[1], [0], [0], [1], [0, 0, 1, 1], [], []>} : vector<16x16xbf16>, vector<16x8xbf16>, vector<16x8xf32> -> vector<16x8xf32>
    %116 = arith.truncf %115 : vector<16x8xf32> to vector<16x8xbf16>
    %c3 = arith.constant 3 : index
    %c0_43 = arith.constant 0 : index
    %c0_44 = arith.constant 0 : index
    %117 = vector.load %arg8[%c3, %c0_43, %c0_44] : memref<4x8x32xbf16, #tpu.memory_space<vmem>>, vector<1x8x32xbf16>
    %118 = vector.shape_cast %117 : vector<1x8x32xbf16> to vector<8x32xbf16>
    %cst_45 = arith.constant dense<0.000000e+00> : vector<16x32xf32>
    %119 = tpu.matmul %116, %118, %cst_45 {dimension_numbers = #tpu.dot_dimension_numbers<[1], [0], [0], [1], [0, 0, 1, 1], [], []>} : vector<16x8xbf16>, vector<8x32xbf16>, vector<16x32xf32> -> vector<16x32xf32>
    %120 = arith.addf %95, %119 : vector<16x32xf32>
    %c0_46 = arith.constant 0 : index
    %c0_47 = arith.constant 0 : index
    %121 = vector.load %arg9[%c0_46, %c0_47] : memref<1x32xf32, #tpu.memory_space<vmem>>, vector<1x32xf32>
    %122 = vector.broadcast %121 : vector<1x32xf32> to vector<16x32xf32>
    %123 = arith.addf %120, %122 : vector<16x32xf32>
    %124 = arith.addf %1, %123 : vector<16x32xf32>
    %cst_48 = arith.constant dense<0.000000e+00> : vector<16xf32>
    %125 = vector.multi_reduction <add>, %124, %cst_48 [1] : vector<16x32xf32> to vector<16xf32>
    %126 = vector.shape_cast %125 : vector<16xf32> to vector<16x1xf32>
    %cst_49 = arith.constant 3.200000e+01 : f32
    %127 = vector.broadcast %cst_49 : f32 to vector<16x1xf32>
    %128 = arith.divf %126, %127 : vector<16x1xf32>
    %129 = arith.mulf %124, %124 : vector<16x32xf32>
    %cst_50 = arith.constant dense<0.000000e+00> : vector<16xf32>
    %130 = vector.multi_reduction <add>, %129, %cst_50 [1] : vector<16x32xf32> to vector<16xf32>
    %131 = vector.shape_cast %130 : vector<16xf32> to vector<16x1xf32>
    %cst_51 = arith.constant 3.200000e+01 : f32
    %132 = vector.broadcast %cst_51 : f32 to vector<16x1xf32>
    %133 = arith.divf %131, %132 : vector<16x1xf32>
    %134 = arith.mulf %128, %128 : vector<16x1xf32>
    %135 = arith.subf %133, %134 : vector<16x1xf32>
    %cst_52 = arith.constant 9.99999974E-6 : f32
    %136 = vector.broadcast %cst_52 : f32 to vector<16x1xf32>
    %137 = arith.addf %135, %136 : vector<16x1xf32>
    %138 = math.rsqrt %137 : vector<16x1xf32>
    %139 = vector.broadcast %128 : vector<16x1xf32> to vector<16x32xf32>
    %140 = arith.subf %124, %139 : vector<16x32xf32>
    %141 = vector.broadcast %138 : vector<16x1xf32> to vector<16x32xf32>
    %142 = arith.mulf %140, %141 : vector<16x32xf32>
    %c0_53 = arith.constant 0 : index
    %c0_54 = arith.constant 0 : index
    %143 = vector.load %arg10[%c0_53, %c0_54] : memref<1x32xf32, #tpu.memory_space<vmem>>, vector<1x32xf32>
    %144 = vector.broadcast %143 : vector<1x32xf32> to vector<16x32xf32>
    %145 = arith.mulf %142, %144 : vector<16x32xf32>
    %c0_55 = arith.constant 0 : index
    %c0_56 = arith.constant 0 : index
    %146 = vector.load %arg11[%c0_55, %c0_56] : memref<1x32xf32, #tpu.memory_space<vmem>>, vector<1x32xf32>
    %147 = vector.broadcast %146 : vector<1x32xf32> to vector<16x32xf32>
    %148 = arith.addf %145, %147 : vector<16x32xf32>
    %149 = arith.truncf %148 : vector<16x32xf32> to vector<16x32xbf16>
    %c0_57 = arith.constant 0 : index
    %c0_58 = arith.constant 0 : index
    %150 = vector.load %arg12[%c0_57, %c0_58] : memref<32x64xbf16, #tpu.memory_space<vmem>>, vector<32x64xbf16>
    %cst_59 = arith.constant dense<0.000000e+00> : vector<16x64xf32>
    %151 = tpu.matmul %149, %150, %cst_59 {dimension_numbers = #tpu.dot_dimension_numbers<[1], [0], [0], [1], [0, 0, 1, 1], [], []>} : vector<16x32xbf16>, vector<32x64xbf16>, vector<16x64xf32> -> vector<16x64xf32>
    %c0_60 = arith.constant 0 : index
    %c0_61 = arith.constant 0 : index
    %152 = vector.load %arg13[%c0_60, %c0_61] : memref<1x64xf32, #tpu.memory_space<vmem>>, vector<1x64xf32>
    %153 = vector.broadcast %152 : vector<1x64xf32> to vector<16x64xf32>
    %154 = arith.addf %151, %153 : vector<16x64xf32>
    %cst_62 = arith.constant 0.000000e+00 : f32
    %155 = vector.broadcast %cst_62 : f32 to vector<16x64xf32>
    %156 = arith.maximumf %154, %155 : vector<16x64xf32>
    %157 = arith.truncf %156 : vector<16x64xf32> to vector<16x64xbf16>
    %c0_63 = arith.constant 0 : index
    %c0_64 = arith.constant 0 : index
    %158 = vector.load %arg14[%c0_63, %c0_64] : memref<64x32xbf16, #tpu.memory_space<vmem>>, vector<64x32xbf16>
    %cst_65 = arith.constant dense<0.000000e+00> : vector<16x32xf32>
    %159 = tpu.matmul %157, %158, %cst_65 {dimension_numbers = #tpu.dot_dimension_numbers<[1], [0], [0], [1], [0, 0, 1, 1], [], []>} : vector<16x64xbf16>, vector<64x32xbf16>, vector<16x32xf32> -> vector<16x32xf32>
    %c0_66 = arith.constant 0 : index
    %c0_67 = arith.constant 0 : index
    %160 = vector.load %arg15[%c0_66, %c0_67] : memref<1x32xf32, #tpu.memory_space<vmem>>, vector<1x32xf32>
    %161 = vector.broadcast %160 : vector<1x32xf32> to vector<16x32xf32>
    %162 = arith.addf %159, %161 : vector<16x32xf32>
    %163 = arith.addf %148, %162 : vector<16x32xf32>
    %cst_68 = arith.constant dense<0.000000e+00> : vector<16xf32>
    %164 = vector.multi_reduction <add>, %163, %cst_68 [1] : vector<16x32xf32> to vector<16xf32>
    %165 = vector.shape_cast %164 : vector<16xf32> to vector<16x1xf32>
    %cst_69 = arith.constant 3.200000e+01 : f32
    %166 = vector.broadcast %cst_69 : f32 to vector<16x1xf32>
    %167 = arith.divf %165, %166 : vector<16x1xf32>
    %168 = arith.mulf %163, %163 : vector<16x32xf32>
    %cst_70 = arith.constant dense<0.000000e+00> : vector<16xf32>
    %169 = vector.multi_reduction <add>, %168, %cst_70 [1] : vector<16x32xf32> to vector<16xf32>
    %170 = vector.shape_cast %169 : vector<16xf32> to vector<16x1xf32>
    %cst_71 = arith.constant 3.200000e+01 : f32
    %171 = vector.broadcast %cst_71 : f32 to vector<16x1xf32>
    %172 = arith.divf %170, %171 : vector<16x1xf32>
    %173 = arith.mulf %167, %167 : vector<16x1xf32>
    %174 = arith.subf %172, %173 : vector<16x1xf32>
    %cst_72 = arith.constant 9.99999974E-6 : f32
    %175 = vector.broadcast %cst_72 : f32 to vector<16x1xf32>
    %176 = arith.addf %174, %175 : vector<16x1xf32>
    %177 = math.rsqrt %176 : vector<16x1xf32>
    %178 = vector.broadcast %167 : vector<16x1xf32> to vector<16x32xf32>
    %179 = arith.subf %163, %178 : vector<16x32xf32>
    %180 = vector.broadcast %177 : vector<16x1xf32> to vector<16x32xf32>
    %181 = arith.mulf %179, %180 : vector<16x32xf32>
    %c0_73 = arith.constant 0 : index
    %c0_74 = arith.constant 0 : index
    %182 = vector.load %arg16[%c0_73, %c0_74] : memref<1x32xf32, #tpu.memory_space<vmem>>, vector<1x32xf32>
    %183 = vector.broadcast %182 : vector<1x32xf32> to vector<16x32xf32>
    %184 = arith.mulf %181, %183 : vector<16x32xf32>
    %c0_75 = arith.constant 0 : index
    %c0_76 = arith.constant 0 : index
    %185 = vector.load %arg17[%c0_75, %c0_76] : memref<1x32xf32, #tpu.memory_space<vmem>>, vector<1x32xf32>
    %186 = vector.broadcast %185 : vector<1x32xf32> to vector<16x32xf32>
    %187 = arith.addf %184, %186 : vector<16x32xf32>
    %c0_77 = arith.constant 0 : index
    %c0_78 = arith.constant 0 : index
    %c0_79 = arith.constant 0 : index
    %188 = vector.load %arg18[%c0_77, %c0_78, %c0_79] : memref<1x16x32xf32, #tpu.memory_space<vmem>>, vector<1x16x32xf32>
    %189 = vector.shape_cast %188 : vector<1x16x32xf32> to vector<16x32xf32>
    %190 = vector.shape_cast %187 : vector<16x32xf32> to vector<1x16x32xf32>
    tpu.vector_store %arg18[%c0_77, %c0_78, %c0_79], %190 {strides = array<i32>} : memref<1x16x32xf32, #tpu.memory_space<vmem>>, vector<1x16x32xf32>,
    return
  }
  func.func @transform_0(%arg0: i32) -> (i32, i32, i32) {
    %c0_i32 = arith.constant 0 : i32
    %c0_i32_0 = arith.constant 0 : i32
    %c0_i32_1 = arith.constant 0 : i32
    return %arg0, %c0_i32, %c0_i32_0 : i32, i32, i32
  }
  func.func @transform_1(%arg0: i32) -> (i32, i32, i32) {
    %c0_i32 = arith.constant 0 : i32
    %c0_i32_0 = arith.constant 0 : i32
    %c0_i32_1 = arith.constant 0 : i32
    return %arg0, %c0_i32, %c0_i32_0 : i32, i32, i32
  }
  func.func @transform_2(%arg0: i32) -> (i32, i32) {
    %c0_i32 = arith.constant 0 : i32
    %c0_i32_0 = arith.constant 0 : i32
    %c0_i32_1 = arith.constant 0 : i32
    return %c0_i32, %c0_i32_0 : i32, i32
  }
  func.func @transform_3(%arg0: i32) -> (i32, i32) {
    %c0_i32 = arith.constant 0 : i32
    %c0_i32_0 = arith.constant 0 : i32
    %c0_i32_1 = arith.constant 0 : i32
    return %c0_i32, %c0_i32_0 : i32, i32
  }
  func.func @transform_4(%arg0: i32) -> (i32, i32) {
    %c0_i32 = arith.constant 0 : i32
    %c0_i32_0 = arith.constant 0 : i32
    %c0_i32_1 = arith.constant 0 : i32
    return %c0_i32, %c0_i32_0 : i32, i32
  }
  func.func @transform_5(%arg0: i32) -> (i32, i32) {
    %c0_i32 = arith.constant 0 : i32
    %c0_i32_0 = arith.constant 0 : i32
    %c0_i32_1 = arith.constant 0 : i32
    return %c0_i32, %c0_i32_0 : i32, i32
  }
  func.func @transform_6(%arg0: i32) -> (i32, i32) {
    %c0_i32 = arith.constant 0 : i32
    %c0_i32_0 = arith.constant 0 : i32
    %c0_i32_1 = arith.constant 0 : i32
    return %c0_i32, %c0_i32_0 : i32, i32
  }
  func.func @transform_7(%arg0: i32) -> (i32, i32, i32) {
    %c0_i32 = arith.constant 0 : i32
    %c0_i32_0 = arith.constant 0 : i32
    %c0_i32_1 = arith.constant 0 : i32
    %c0_i32_2 = arith.constant 0 : i32
    return %c0_i32, %c0_i32_0, %c0_i32_1 : i32, i32, i32
  }
  func.func @transform_8(%arg0: i32) -> (i32, i32) {
    %c0_i32 = arith.constant 0 : i32
    %c0_i32_0 = arith.constant 0 : i32
    %c0_i32_1 = arith.constant 0 : i32
    return %c0_i32, %c0_i32_0 : i32, i32
  }
  func.func @transform_9(%arg0: i32) -> (i32, i32) {
    %c0_i32 = arith.constant 0 : i32
    %c0_i32_0 = arith.constant 0 : i32
    %c0_i32_1 = arith.constant 0 : i32
    return %c0_i32, %c0_i32_0 : i32, i32
  }
  func.func @transform_10(%arg0: i32) -> (i32, i32) {
    %c0_i32 = arith.constant 0 : i32
    %c0_i32_0 = arith.constant 0 : i32
    %c0_i32_1 = arith.constant 0 : i32
    return %c0_i32, %c0_i32_0 : i32, i32
  }
  func.func @transform_11(%arg0: i32) -> (i32, i32) {
    %c0_i32 = arith.constant 0 : i32
    %c0_i32_0 = arith.constant 0 : i32
    %c0_i32_1 = arith.constant 0 : i32
    return %c0_i32, %c0_i32_0 : i32, i32
  }
  func.func @transform_12(%arg0: i32) -> (i32, i32) {
    %c0_i32 = arith.constant 0 : i32
    %c0_i32_0 = arith.constant 0 : i32
    %c0_i32_1 = arith.constant 0 : i32
    return %c0_i32, %c0_i32_0 : i32, i32
  }
  func.func @transform_13(%arg0: i32) -> (i32, i32) {
    %c0_i32 = arith.constant 0 : i32
    %c0_i32_0 = arith.constant 0 : i32
    %c0_i32_1 = arith.constant 0 : i32
    return %c0_i32, %c0_i32_0 : i32, i32
  }
  func.func @transform_14(%arg0: i32) -> (i32, i32) {
    %c0_i32 = arith.constant 0 : i32
    %c0_i32_0 = arith.constant 0 : i32
    %c0_i32_1 = arith.constant 0 : i32
    return %c0_i32, %c0_i32_0 : i32, i32
  }
  func.func @transform_15(%arg0: i32) -> (i32, i32) {
    %c0_i32 = arith.constant 0 : i32
    %c0_i32_0 = arith.constant 0 : i32
    %c0_i32_1 = arith.constant 0 : i32
    return %c0_i32, %c0_i32_0 : i32, i32
  }
  func.func @transform_16(%arg0: i32) -> (i32, i32) {
    %c0_i32 = arith.constant 0 : i32
    %c0_i32_0 = arith.constant 0 : i32
    %c0_i32_1 = arith.constant 0 : i32
    return %c0_i32, %c0_i32_0 : i32, i32
  }
  func.func @transform_17(%arg0: i32) -> (i32, i32, i32) {
    %c0_i32 = arith.constant 0 : i32
    %c0_i32_0 = arith.constant 0 : i32
    %c0_i32_1 = arith.constant 0 : i32
    return %arg0, %c0_i32, %c0_i32_0 : i32, i32, i32
  }
}

</mosaic_0001>

<bundles_post_ra>
// kernel: tpu_custom_call.1
= control target key start
LH: loop header
LB: loop body
LE: loop exit
PB: predicated region body
PF: predicated region fallthrough
CT: control target
= control target key end

     0   :  { %s3156_s0 = inlined_call_operand.vmem [shape: f32[2,16,32], index: 0, kind: input, shape index: {}]   ;;  %s3157_s1 = inlined_call_operand.hbm [shape: f32[2,16,32], index: 1, kind: input, shape index: {}]   ;;  %s3158_s2 = inlined_call_operand.vmem [shape: f32[16,16], index: 2, kind: input, shape index: {}]   ;;  %s3159_s3 = inlined_call_operand.hbm [shape: bf16[32,64], index: 3, kind: input, shape index: {}]   ;;  %s3160_s4 = inlined_call_operand.vmem [shape: f32[1,64], index: 4, kind: input, shape index: {}]   ;;  %s3161_s5 = inlined_call_operand.hbm [shape: bf16[32,32], index: 5, kind: input, shape index: {}]   ;;  %s3162_s6 = inlined_call_operand.vmem [shape: f32[1,32], index: 6, kind: input, shape index: {}]   ;;  %s3163_s7 = inlined_call_operand.hbm [shape: bf16[4,8,32], index: 7, kind: input, shape index: {}]   ;;  %s3164_s8 = inlined_call_operand.hbm [shape: f32[1,32], index: 8, kind: input, shape index: {}]   ;;  %s3165_s9 = inlined_call_operand.hbm [shape: f32[1,32], index: 9, kind: input, shape index: {}]   ;;  %s3166_s10 = inlined_call_operand.vmem [shape: f32[1,32], index: 10, kind: input, shape index: {}]   ;;  %s3167_s11 = inlined_call_operand.vmem [shape: bf16[32,64], index: 11, kind: input, shape index: {}]   ;;  %s3168_s12 = inlined_call_operand.vmem [shape: f32[1,64], index: 12, kind: input, shape index: {}]   ;;  %s3169_s13 = inlined_call_operand.vmem [shape: bf16[64,32], index: 13, kind: input, shape index: {}]   ;;  %s3170_s14 = inlined_call_operand.vmem [shape: f32[1,32], index: 14, kind: input, shape index: {}]   ;;  %s3171_s15 = inlined_call_operand.vmem [shape: f32[1,32], index: 15, kind: input, shape index: {}]   ;;  %s3172_s16 = inlined_call_operand.vmem [shape: f32[1,32], index: 16, kind: input, shape index: {}]   ;;  %s3173_s17 = inlined_call_operand.hbm [shape: f32[2,16,32], index: 17, kind: output, shape index: {}]  }
   0x1   :  { %3180 = sst [smem:[#allocation19_spill]] %s3156_s0 }
   0x2   :  { %3181 = sst [smem:[#allocation20_spill]] %s3157_s1 }
   0x3   :  { %3182 = sst [smem:[#allocation21_spill]] %s3159_s3 }
   0x4   :  { %3183 = sst [smem:[#allocation22_spill]] %s3166_s10 }
   0x5   :  { %3184 = sst [smem:[#allocation23_spill]] %s3168_s12 }
   0x6   :  { %3185 = sst [smem:[#allocation24_spill]] %s3169_s13 }
   0x7   :  { %3186 = sst [smem:[#allocation25_spill]] %s3170_s14 }
   0x8   :  { %3187 = sst [smem:[#allocation26_spill]] %s3171_s15 }
   0x9   :  { %3188 = sst [smem:[#allocation27_spill]] %s3172_s16 }
   0xa   :  { %3189 = sst [smem:[#allocation28_spill]] %s3173_s17 }
   0xb   :  { %22 = vsyncpa [#allocation3], 0 }
   0xc   :  { %24 = vsyncpa [#allocation3 + $0x1], 0 }
   0xd   :  { %25 = vsyncpa [#allocation6], 0 }
   0xe   :  { %26 = vsyncpa [#allocation9], 0 }
   0xf   :  { %27 = vsyncpa [#allocation12], 0 }
  0x10   :  { %28 = vsyncpa [#allocation4], 0 }
  0x11   :  { %30 = vsyncpa [#allocation4 + $0x1], 0  ;;  %s2639_s24 = smov 0   ;;  %s2641_s25 = smov 0  }
  0x12   :  { %s2643_s26 = smov 0   ;;  %s2645_s27 = smov 0  }
  0x13 LB: > { %s2527_s28 = smov [#allocation5]   ;;  %s2660_s0 = sadd.s32 4294967295, %s2525_s27   ;;  %s2525_s27 = sphi %s2645_s27, %s3221_s27   ;;  %s2521_s26 = sphi %s2643_s26, %s3220_s26   ;;  %s2517_s25 = sphi %s2641_s25, %s3219_s25   ;;  %s2513_s24 = sphi %s2639_s24, %s3218_s24  }
  0x14   : > { %s449_s29 = sshll.u32 %s2527_s28, 4  ;;  %p1906_p0 = scmp.ge.s32.totalorder %s2525_s27, 1  ;;  %s2665_s29 = int_to_ptr.vmem [resolvable:$true] %s449_s29 }
  0x15   : > { %p3177_p1 = scmp.eq.s32.totalorder %s2660_s0, 0  ;;  %p434_p2 = scmp.lt.s32.totalorder %s2525_s27, 3 }
  0x16   : > { %s2528_s18 = smov [#allocation8]   ;;  %s2529_s20 = smov [#allocation7]  }
  0x17   : > { %p2667_p3 = pnand %p1906_p0, %p434_p2  ;;  %s481_s19 = sshll.u32 %s2528_s18, 4  ;;  %s2680_s19 = int_to_ptr.vmem [resolvable:$true] %s481_s19 }
  0x18   : > { %s465_s21 = sshll.u32 %s2529_s20, 4  ;;  %s3192_s3 = sld [smem:[#allocation21_spill]]  ;;  %s2682_s21 = int_to_ptr.vmem [resolvable:$true] %s465_s21 }
  0x19   : > { %s3190_s30 = scalar_select %p2667_p3, 1, 0 }
  0x1a   : > { %p2139_p5 = pneg %p2667_p3 }
  0x1c   : > { %p2676_p6 = pnand %p2139_p5, %p3177_p1 }
  0x1e   : > { %s2277_s28 = scalar_lea.hbm %s3192_s3, 256  ;;  %p2692_p8 = pneg %p2676_p6 }
  0x1f   : > { %p2278_p7 = scmp.ne.s32.totalorder %s3192_s3, %s2277_s28  ;;  %p2284_p11 = scmp.lt.u32.totalorder %s2277_s28, %s3192_s3 }
  0x21   : > { %p2280_p9 = pnand %p2692_p8, %p2278_p7 }
  0x23   : > { %p2281_p10 = pneg %p2280_p9 }
  0x25   : > { %p2286_p12 = pnand %p2284_p11, %p2281_p10 }
  0x27   : > { %2289 = shalt.err (!%p2286_p12)
}
  0x28   : > { %s2290_s16 = scalar_lea.vmem %s2665_s29, 256  ;;  %p2298_p5 = scmp.lt.s32.totalorder %s2665_s29, %s2665_s29 }
  0x29   : > { %p2291_p13 = scmp.ne.s32.totalorder %s2665_s29, %s2290_s16  ;;  %p2299_p4 = scmp.lt.s32.totalorder %s2290_s16, %s2290_s16 }
  0x2b   : > { %p2293_p0 = pnand %p2291_p13, %p2692_p8  ;;  %p2300_p7 = por %p2299_p4, %p2298_p5 }
  0x2d   : > { %p2294_p2 = pneg %p2293_p0 }
  0x2f   : > { %p2301_p9 = pnand %p2300_p7, %p2294_p2 }
  0x31   : > { %2304 = shalt.err (!%p2301_p9)
}
  0x32   : > { %s2530_s17 = smov 64   ;;  %s2531_s15 = smov 4  }
  0x33   : > { %2142 = dma.hbm_to_vmem [thread:$0]  (!%p2676_p6), %s3192_s3, 256, %s2665_s29, [#allocation6], %s2530_s17, %s2530_s17, %s2531_s15  }
  0x34   : > { %s2305_s16 = scalar_lea.hbm %s3163_s7, 256 }
  0x35   : > { %p2306_p4 = scmp.ne.s32.totalorder %s3163_s7, %s2305_s16  ;;  %p2312_p12 = scmp.lt.u32.totalorder %s2305_s16, %s3163_s7 }
  0x37   : > { %p2308_p10 = pnand %p2306_p4, %p2692_p8 }
  0x39   : > { %p2309_p11 = pneg %p2308_p10 }
  0x3b   : > { %p2314_p13 = pnand %p2312_p12, %p2309_p11 }
  0x3d   : > { %2317 = shalt.err (!%p2314_p13)
}
  0x3e   : > { %s2318_s29 = scalar_lea.vmem %s2680_s19, 256  ;;  %p2326_p7 = scmp.lt.s32.totalorder %s2680_s19, %s2680_s19 }
  0x3f   : > { %p2319_p0 = scmp.ne.s32.totalorder %s2680_s19, %s2318_s29  ;;  %p2327_p9 = scmp.lt.s32.totalorder %s2318_s29, %s2318_s29 }
  0x41   : > { %p2321_p2 = pnand %p2319_p0, %p2692_p8  ;;  %p2328_p4 = por %p2327_p9, %p2326_p7 }
  0x43   : > { %p2322_p5 = pneg %p2321_p2 }
  0x45   : > { %p2329_p10 = pnand %p2328_p4, %p2322_p5 }
  0x47   : > { %2332 = shalt.err (!%p2329_p10)
}
  0x48   : > { %2148 = dma.hbm_to_vmem [thread:$0]  (!%p2676_p6), %s3163_s7, 256, %s2680_s19, [#allocation9], %s2530_s17, %s2530_s17, %s2531_s15  }
  0x49   : > { %s2333_s22 = scalar_lea.hbm %s3161_s5, 256 }
  0x4a   : > { %p2334_p11 = scmp.ne.s32.totalorder %s3161_s5, %s2333_s22  ;;  %p2340_p0 = scmp.lt.u32.totalorder %s2333_s22, %s3161_s5 }
  0x4c   : > { %p2336_p12 = pnand %p2334_p11, %p2692_p8 }
  0x4e   : > { %p2337_p13 = pneg %p2336_p12 }
  0x50   : > { %p2342_p2 = pnand %p2340_p0, %p2337_p13 }
  0x52   : > { %2345 = shalt.err (!%p2342_p2)
}
  0x53   : > { %s2346_s19 = scalar_lea.vmem %s2682_s21, 256  ;;  %p2354_p4 = scmp.lt.s32.totalorder %s2682_s21, %s2682_s21 }
  0x54   : > { %p2347_p5 = scmp.ne.s32.totalorder %s2682_s21, %s2346_s19  ;;  %p2355_p10 = scmp.lt.s32.totalorder %s2346_s19, %s2346_s19 }
  0x56   : > { %p2349_p7 = pnand %p2347_p5, %p2692_p8  ;;  %p2356_p11 = por %p2355_p10, %p2354_p4 }
  0x58   : > { %p2350_p9 = pneg %p2349_p7 }
  0x5a   : > { %p2357_p12 = pnand %p2356_p11, %p2350_p9 }
  0x5c   : > { %2360 = shalt.err (!%p2357_p12)
}
  0x5d   : > { %2145 = dma.hbm_to_vmem [thread:$0]  (!%p2676_p6), %s3161_s5, 256, %s2682_s21, [#allocation6], %s2530_s17, %s2530_s17, %s2531_s15  }
  0x5e   : > { %s2532_s12 = smov [#allocation10]   ;;  %s2533_s14 = smov [#allocation11]  }
  0x5f   : > { %s495_s13 = sshll.u32 %s2532_s12, 4  ;;  %s506_s22 = sshll.u32 %s2533_s14, 4  ;;  %s496_s13 = int_to_ptr.vmem [resolvable:$true] %s495_s13  ;;  %s507_s22 = int_to_ptr.vmem [resolvable:$true] %s506_s22 }
  0x60   : > { %s2361_s20 = scalar_lea.hbm %s3164_s8, 16 }
  0x61   : > { %p2362_p13 = scmp.ne.s32.totalorder %s3164_s8, %s2361_s20  ;;  %p2368_p5 = scmp.lt.u32.totalorder %s2361_s20, %s3164_s8 }
  0x63   : > { %p2364_p0 = pnand %p2362_p13, %p2692_p8 }
  0x65   : > { %p2365_p2 = pneg %p2364_p0 }
  0x67   : > { %p2370_p7 = pnand %p2368_p5, %p2365_p2 }
  0x69   : > { %2373 = shalt.err (!%p2370_p7)
}
  0x6a   : > { %s2374_s21 = scalar_lea.vmem %s496_s13, 16  ;;  %s2381_s17 = scalar_lea.vmem %s496_s13, 32 }
  0x6b   : > { %p2375_p9 = scmp.ne.s32.totalorder %s496_s13, %s2374_s21  ;;  %p2382_p11 = scmp.lt.s32.totalorder %s496_s13, %s496_s13 }
  0x6c   : > { %p2383_p12 = scmp.lt.s32.totalorder %s2381_s17, %s2374_s21 }
  0x6d   : > { %p2377_p4 = pnand %p2375_p9, %p2692_p8 }
  0x6e   : > { %p2384_p1 = por %p2383_p12, %p2382_p11 }
  0x6f   : > { %p2378_p10 = pneg %p2377_p4 }
  0x71   : > { %p2385_p3 = pnand %p2384_p1, %p2378_p10 }
  0x73   : > { %2388 = shalt.err (!%p2385_p3)
}
  0x74   : > { %2151 = dma.hbm_to_vmem [thread:$0]  (!%p2676_p6), %s3164_s8, 16, %s496_s13, [#allocation9]  }
  0x75   : > { %s2389_s14 = scalar_lea.hbm %s3165_s9, 16 }
  0x76   : > { %p2390_p13 = scmp.ne.s32.totalorder %s3165_s9, %s2389_s14  ;;  %p2396_p3 = scmp.lt.u32.totalorder %s2389_s14, %s3165_s9 }
  0x78   : > { %p2392_p0 = pnand %p2390_p13, %p2692_p8 }
  0x7a   : > { %p2393_p1 = pneg %p2392_p0 }
  0x7c   : > { %p2398_p2 = pnand %p2396_p3, %p2393_p1 }
  0x7e   : > { %2401 = shalt.err (!%p2398_p2)
}
  0x7f   : > { %s2402_s19 = scalar_lea.vmem %s507_s22, 16  ;;  %s2409_s13 = scalar_lea.vmem %s507_s22, 32 }
  0x80   : > { %p2403_p5 = scmp.ne.s32.totalorder %s507_s22, %s2402_s19  ;;  %p2410_p4 = scmp.lt.s32.totalorder %s507_s22, %s507_s22 }
  0x81   : > { %p2411_p10 = scmp.lt.s32.totalorder %s2409_s13, %s2402_s19 }
  0x82   : > { %p2405_p7 = pnand %p2403_p5, %p2692_p8 }
  0x83   : > { %p2412_p11 = por %p2411_p10, %p2410_p4 }
  0x84   : > { %p2406_p9 = pneg %p2405_p7 }
  0x86   : > { %p2413_p12 = pnand %p2412_p11, %p2406_p9 }
  0x88   : > { %2416 = shalt.err (!%p2413_p12)
}
  0x89   : > { %2154 = dma.hbm_to_vmem [thread:$0]  (!%p2676_p6), %s3165_s9, 16, %s507_s22, [#allocation12]  }
  0x8a   : > { %s1905_s18 = sadd.s32 4294967294, %s2525_s27   ;;  %s2806_s1 = sadd.s32 1, %s2525_s27  }
  0x8b   : > { %s69_s17 = sadd.s32 1, %s2521_s26  ;;  %s66_s15 = ssub.s32 %s2525_s27, %s2806_s1 }
  0x8c   : > { %p76_p8 = scmp.ne.s32.totalorder %s2521_s26, %s2517_s25  ;;  %p67_p13 = scmp.eq.s32.totalorder %s66_s15, 0 }
  0x8d   : > { %p77_p0 = scmp.eq.s32.totalorder %s2525_s27, 0  ;;  %p82_p1 = scmp.ne.s32.totalorder %s2517_s25, %s2513_s24 }
  0x8e   : > { %p421_p3 = scmp.eq.s32.totalorder %s2660_s0, 1  ;;  %p3194_p5 = scmp.eq.s32.totalorder %s2660_s0, 0 }
  0x8f   : > { %s2818_s10 = scalar_select %p67_p13, %s2521_s26, %s69_s17  }
  0x90   : > { %p78_p2 = por %p77_p0, %p76_p8  ;;  %p2822_p7 = por %p3194_p5, %p82_p1 }
  0x91   : > { %p2826_p6 = por %p421_p3, %p76_p8  ;;  %p427_p9 = scmp.eq.s32.totalorder %s1905_s18, 1 }
  0x92   : > { %p2168_p4 = scmp.lt.s32.totalorder %s2525_s27, 2  ;;  %s546_s12 = sand.u32 1, %s2521_s26  }
  0x93   : > { %s3196_s22 = scalar_select %p2826_p6, 1, 0 }
  0x94   : > { %p2832_p10 = por %p427_p9, %p82_p1  ;;  %s1913_s23 = sshll.u32 %s546_s12, 4 }
  0x95   : > { %s1966_s28 = sshll.u32 %s2525_s27, 8  ;;  %s3198_s19 = sld [smem:[#allocation20_spill]] }
  0x96   : > { %s3197_s14 = scalar_select %p2832_p10, 1, 0 }
  0x97   : > { %s550_s29 = scalar_lea.vmem [#allocation2], %s1913_s23  ;;  %p2842_p11 = pnand %p2168_p4, %p78_p2 }
  0x98   : > { %s557_s21 = sshll.u32 %s550_s29, 4  ;;  %s2848_s17 = scalar_lea.sflag [#allocation3], %s546_s12  ;;  %s2846_s21 = int_to_ptr.vmem [resolvable:$true] %s557_s21 }
  0x99   : > { %p2419_p8 = pneg %p2842_p11 }
  0x9b   : > { %s2840_s13 = scalar_lea.hbm %s3198_s19, %s1966_s28  ;;  %s2422_s20 = scalar_lea.hbm %s3198_s19, 512 }
  0x9c   : > { %s2417_s15 = scalar_lea.hbm %s2840_s13, 256  ;;  %p2423_p1 = scmp.lt.u32.totalorder %s2840_s13, %s3198_s19 }
  0x9d   : > { %p2418_p12 = scmp.ne.s32.totalorder %s2840_s13, %s2417_s15  ;;  %p2424_p3 = scmp.lt.u32.totalorder %s2422_s20, %s2417_s15 }
  0x9e   : > { %p2426_p5 = scmp.lt.u32.totalorder %s2417_s15, %s2840_s13 }
  0x9f   : > { %p2420_p13 = pnand %p2419_p8, %p2418_p12  ;;  %p2425_p2 = por %p2424_p3, %p2423_p1 }
  0xa1   : > { %p2421_p0 = pneg %p2420_p13  ;;  %p2427_p9 = por %p2426_p5, %p2425_p2 }
  0xa3   : > { %p2428_p4 = pnand %p2427_p9, %p2421_p0 }
  0xa5   : > { %2431 = shalt.err (!%p2428_p4)
}
  0xa6   : > { %s2432_s12 = scalar_lea.vmem %s2846_s21, 256  ;;  %s2534_s23 = smov [#allocation2]  }
  0xa7   : > { %p2433_p12 = scmp.ne.s32.totalorder %s2846_s21, %s2432_s12  ;;  %s2437_s28 = sshll.u32 %s2534_s23, 4  ;;  %s2438_s28 = int_to_ptr.vmem [resolvable:$false] %s2437_s28 }
  0xa8   : > { %s2439_s16 = scalar_lea.vmem %s2438_s28, 512  ;;  %p2440_p6 = scmp.lt.s32.totalorder %s2846_s21, %s2438_s28 }
  0xa9   : > { %p2435_p13 = pnand %p2433_p12, %p2419_p8  ;;  %p2441_p1 = scmp.lt.s32.totalorder %s2439_s16, %s2432_s12 }
  0xab   : > { %p2436_p10 = pneg %p2435_p13  ;;  %p2442_p3 = por %p2441_p1, %p2440_p6 }
  0xad   : > { %p2443_p2 = pnand %p2442_p3, %p2436_p10 }
  0xaf   : > { %2446 = shalt.err (!%p2443_p2)
}
  0xb0   : > { %s2535_s15 = smov 128   ;;  %s2536_s20 = smov 8  }
  0xb1   : > { %2158 = dma.hbm_to_vmem [thread:$0]  (!%p2842_p11), %s2840_s13, 256, %s2846_s21, %s2848_s17, %s2535_s15, %s2535_s15, %s2536_s20  }
  0xb2   : > { %p3200_p8 = scmp.ne.s32.totalorder %s3190_s30, 0 }
  0xb3   : > { %s2879_s29 = sand.u32 (!%p3200_p8), 1, %s2517_s25  }
  0xb4   : > { %569 = sbr.rel (%p3200_p8) target bundleno = 3628 (0xe2c), region = 88  ;;  %s1917_s12 = sshll.u32 (!%p3200_p8), %s2879_s29, 4 }
  0xb5   : > { %s572_s23 = scalar_lea.sflag (!%p3200_p8), [#allocation3], %s2879_s29  ;;  %s575_s28 = scalar_lea.vmem (!%p3200_p8), [#allocation2], %s1917_s12 }
  0xbb   : > { %2492 = dma.done.wait (%p2822_p7), %s572_s23, 256  }
  0xbc   : > { %2494 = vsyncadd (%p2822_p7), %s572_s23, 4294967040  ;;  %p3201_p6 = scmp.eq.s32.totalorder %s2660_s0, 0 }
  0xbe   : > { %2496 = dma.done.wait (%p3201_p6), [#allocation6], 512   ;;  %p3202_p10 = pmov %p3201_p6 }
  0xbf   : > { %p3203_p11 = pmov %p3201_p6 }
  0xc0   : > { %2498 = vsyncadd (%p3202_p10), [#allocation6], 4294966784 }
  0xc1   : > { %2500 = dma.done.wait (%p3203_p11), [#allocation9], 272   ;;  %p3204_p0 = pmov %p3201_p6 }
  0xc3   : > { %2502 = vsyncadd (%p3204_p0), [#allocation9], 4294967024  ;;  %p3205_p5 = pmov %p3204_p0 }
  0xc4   : > { %p3206_p9 = pmov %p3204_p0 }
  0xc5   : > { %2504 = dma.done.wait (%p3205_p5), [#allocation12], 16  }
  0xc6   : > { %2506 = vsyncadd (%p3206_p9), [#allocation12], 4294967280  ;;  %p651_p7 = scmp.lt.s32.totalorder %s2660_s0, 1  ;;  %v2537_v0 = vmov 0.0   ;;  %vm2538_vm0 = vmmov 0   ;;  %s3207_s18 = sld [smem:[#allocation19_spill]] }
  0xc7   : > { %2007 = vmatprep.subr.bf16.mxu0 %v2537_v0  ;;  %2011 = vmatprep.mubr.msk.bf16.mxu0 %vm2538_vm0, %v2537_v0  ;;  %v2227_v1 = vld [vmem:[#allocation5] sm:$0xff]   ;;  %v2228_v2 = vld [vmem:[#allocation5 + $0x8] sm:$0xff]   ;;  %vm690_vm1 = vcmask 261120   ;;  %s2539_s20 = smov 120   ;;  %s2540_s23 = smov 96   ;;  %v2229_v18 = vld [vmem:[#allocation7] sm:$0xff]  }
  0xc8   : > { %s652_s30 = scalar_select %p651_p7, %s2660_s0, 1  ;;  %2015 = vmatprep.subr.bf16.mxu1 %v2537_v0  ;;  %2019 = vmatprep.mubr.msk.bf16.mxu1 %vm2538_vm0, %v2537_v0  ;;  %v659_v5 = vld [vmem:[%s575_s28] sm:$0xff]  ;;  %v660_v6 = vld [vmem:[%s575_s28 + $0x8] sm:$0xff]  ;;  %vm807_vm2 = vcmask 64512   ;;  %vm855_vm3 = vcmask 130048   ;;  %vm1053_vm4 = vcmask 1043456  }
  0xc9   : > { %2008 = vmatpush3.bf16.msra.mxu0 %v2227_v1  ;;  %v1926_v10 = vld [vmem:[%s3160_s4] ss:$0 sm:$0xff]  ;;  %s2541_s28 = smov 88   ;;  %2016 = vmatpush3.bf16.msra.mxu1 %v2229_v18  ;;  %v2230_v19 = vld [vmem:[#allocation7 + $0x8] sm:$0xff]   ;;  %v2958_v28 = vld [vmem:[%s3158_s2 + $0x8] sm:$0xff]  ;;  %s2542_s16 = smov 80  }
  0xca   : > { %s1967_s3 = sshll.u32 %s652_s30, 4  ;;  %2009 = vmatprep.subr.bf16.mxu0 %v2537_v0  ;;  %2017 = vmatprep.subr.bf16.mxu1 %v2537_v0  ;;  %v2953_v26 = vld [vmem:[%s3158_s2] sm:$0xff]  ;;  %s2543_s15 = smov 112   ;;  %vm1661_vm5 = vcmask 523264  }
  0xcb   : > { %v1930_v44 = vld [vmem:[%s3162_s6] ss:$0 sm:$0xff]  ;;  %s3212_s13 = sld [smem:[#allocation26_spill]]  ;;  %s1759_s21 = scalar_lea.sflag [#allocation4], %s2879_s29 }
  0xcc   : > { %s655_s17 = scalar_lea.vmem %s3207_s18, %s1967_s3  ;;  %s3214_s3 = sld [smem:[#allocation28_spill]] }
  0xcd   : > { %v2912_v3 = vld [vmem:[%s655_s17] sm:$0xff]  ;;  %v2914_v4 = vld [vmem:[%s655_s17 + $0x8] sm:$0xff]  ;;  %2010 = vmatpush3.bf16.msra.mxu0 %v2228_v2  ;;  %2018 = vmatpush3.bf16.msra.mxu1 %v2230_v19  ;;  %s3208_s17 = sld [smem:[#allocation24_spill]]  ;;  %p3215_p12 = scmp.ne.s32.totalorder %s3196_s22, 0 }
  0xce   : > { %v663_v7 = vadd.f32 %v659_v5, %v2912_v3  ;;  %v664_v8 = vadd.f32 %v660_v6, %v2914_v4  ;;  %2023 = vmatprep.subr.bf16.mxu0 %v2537_v0  ;;  %v666_v20 = vpack.c.bf16 %v2914_v4, %v2912_v3  ;;  %2029 = vmatprep.subr.bf16.mxu1 %v2537_v0 }
  0xd0   : > { %v665_v9 = vpack.c.bf16 %v664_v8, %v663_v7  ;;  %2020 = vmatmul.mubr.msk.bf16.vlgmr.msra.gmra.mrb[0].mxu1 %vm690_vm1, %v666_v20 }
  0xd1   : > { %2031 = vmatprep.mubr.msk.bf16.mxu1 %vm2538_vm0, %v2537_v0 }
  0xd2   : > { %2012 = vmatmul.mubr.msk.bf16.vlgmr.msra.gmra.mrb[0].mxu0 %vm690_vm1, %v665_v9 }
  0xd3   : > { %2025 = vmatprep.mubr.msk.bf16.mxu0 %vm2538_vm0, %v2537_v0 }
 0x1a3   : > { %v795_v45 = vpop.f32.mrb[0].mxu1 }
 0x1a4   : > { %v796_v46 = vadd.f32 %v1930_v44, %v795_v45  ;;  %v2021_v47 = vpop.f32.mrb[1].mxu1 }
 0x1a5   : > { %v728_v11 = vpop.f32.mrb[0].mxu0  ;;  %v798_v48 = vpop.f32.mrb[2].mxu1 }
 0x1a6   : > { %v2013_v12 = vpop.f32.mrb[1].mxu0  ;;  %v729_v14 = vadd.f32 %v1926_v10, %v728_v11  ;;  %v799_v49 = vadd.f32 %v1930_v44, %v798_v48  ;;  %v2022_v50 = vpop.f32.mrb[3].mxu1 }
 0x1a7   : > { %v731_v13 = vpop.f32.mrb[2].mxu0 }
 0x1a8   : > { %v732_v15 = vadd.f32 %v1926_v10, %v731_v13  ;;  %v2014_v16 = vpop.f32.mrb[3].mxu0  ;;  %v2971_v51 = vpack.c.bf16 %v799_v49, %v796_v46 }
 0x1aa   : > { %v2926_v17 = vpack.c.bf16 %v732_v15, %v729_v14  ;;  %2030 = vmatpush3.bf16.msra.mxu1 %v2971_v51 }
 0x1ab   : > { %2041 = vmatprep.subr.bf16.mxu1 %v2537_v0 }
 0x1ac   : > { %925 = vrot.lane.b32.xlu1 %v2926_v17, %s2539_s20  ;;  %805 = vrot.lane.b32.xlu0 %v2926_v17, %s2540_s23  ;;  %s2545_s23 = smov 72  }
 0x1b0   : > { %927 = vrot.lane.b32.xlu0 %v2926_v17, %s2541_s28  ;;  %s3209_s28 = sld [smem:[#allocation22_spill]] }
 0x21e   : > { %v806_v21 = vpop.permute.xlu0 %805  ;;  %v926_v25 = vpop.permute.xlu1 %925 }
 0x21f   : > { %v812_v22 = vsel %vm807_vm2, %v806_v21, 0 }
 0x220   : > { %2024 = vmatpush3.bf16.xpose.msra.mxu0 %v812_v22 }
 0x221   : > { %2035 = vmatprep.subr.bf16.mxu0 %v2537_v0 }
 0x222   : > { %v928_v23 = vpop.permute.xlu0 %927 }
 0x223   : > { %v933_v24 = vsel %vm807_vm2, %v928_v23, 0 }
 0x227   : > { %2026 = vmatmul.mubr.msk.bf16.vlgmr.msra.gmra.mrb[4].mxu0 %vm807_vm2, %v2926_v17 }
 0x228   : > { %2036 = vmatpush3.bf16.xpose.msra.mxu0 %v933_v24  ;;  %2037 = vmatprep.mubr.msk.bf16.mxu0 %vm2538_vm0, %v2537_v0 }
 0x229   : > { %2047 = vmatprep.subr.bf16.mxu0 %v2537_v0 }
 0x22f   : > { %2038 = vmatmul.mubr.msk.bf16.vlgmr.msra.gmra.mrb[8].mxu0 %vm807_vm2, %v926_v25 }
 0x230   : > { %2049 = vmatprep.mubr.msk.bf16.mxu0 %vm2538_vm0, %v2537_v0 }
 0x2fa   : > { %v848_v27 = vpop.f32.mrb[4].mxu0 }
 0x2fb   : > { %v849_v29 = vadd.f32 %v848_v27, %v2953_v26  ;;  %v2027_v30 = vpop.f32.mrb[5].mxu0 }
 0x2fc   : > { %v851_v31 = vpop.f32.mrb[6].mxu0 }
 0x2fd   : > { %v852_v32 = vadd.f32 %v851_v31, %v2958_v28  ;;  %v2028_v33 = vpop.f32.mrb[7].mxu0  ;;  %v856_v34 = vsel %vm855_vm3, %v849_v29, -inf  ;;  %v1049_v31 = vld [vmem:[#allocation8 + $0x4] sm:$0xf] }
 0x2fe   : > { %857 = vmax.xlane.f32.xlu1 %v856_v34 }
 0x2ff   : > { %v859_v35 = vsel %vm855_vm3, %v852_v32, -inf }
 0x300   : > { %860 = vmax.xlane.f32.xlu0 %v859_v35 }
 0x302   : > { %v969_v36 = vpop.f32.mrb[8].mxu0 }
 0x303   : > { %v970_v37 = vadd.f32 %v969_v36, %v2953_v26  ;;  %v2039_v38 = vpop.f32.mrb[9].mxu0 }
 0x304   : > { %v972_v39 = vpop.f32.mrb[10].mxu0 }
 0x305   : > { %v973_v40 = vadd.f32 %v972_v39, %v2958_v28  ;;  %v2040_v41 = vpop.f32.mrb[11].mxu0  ;;  %v976_v42 = vsel %vm855_vm3, %v970_v37, -inf }
 0x306   : > { %977 = vmax.xlane.f32.xlu0 %v976_v42 }
 0x307   : > { %v979_v43 = vsel %vm855_vm3, %v973_v40, -inf }
 0x308   : > { %980 = vmax.xlane.f32.xlu1 %v979_v43 }
 0x38b   : > { %v858_v52 = vpop.xlane.xlu1 %857 }
 0x38c   : > { %v862_v53 = vsub.f32 %v849_v29, %v858_v52  ;;  %v924_v29 = vld [vmem:[#allocation8] sm:$0xf] }
 0x38d   : > { %v861_v54 = vpop.xlane.xlu0 %860  ;;  %v1102_v30 = vsel %vm1053_vm4, %v924_v29, 0 }
 0x38e   : > { %v864_v55 = vmul.f32 1.442695, %v862_v53  ;;  %v863_v56 = vsub.f32 %v852_v32, %v861_v54  ;;  %v1055_v32 = vsel %vm1053_vm4, %v1049_v31, 0 }
 0x38f   : > { %2048 = vmatpush3.bf16.msra.mxu0 %v1055_v32 }
 0x390   : > { %2237 = vpow2.f32 %v864_v55  ;;  %v866_v57 = vmul.f32 1.442695, %v863_v56  ;;  %2059 = vmatprep.subr.bf16.mxu0 %v2537_v0 }
 0x392   : > { %2239 = vpow2.f32 %v866_v57 }
 0x393   : > { %v978_v58 = vpop.xlane.xlu0 %977 }
 0x394   : > { %v982_v59 = vsub.f32 %v970_v37, %v978_v58 }
 0x395   : > { %v981_v60 = vpop.xlane.xlu1 %980 }
 0x396   : > { %v984_v61 = vmul.f32 1.442695, %v982_v59  ;;  %v983_v62 = vsub.f32 %v973_v40, %v981_v60 }
 0x398   : > { %2241 = vpow2.f32 %v984_v61  ;;  %v986_v63 = vmul.f32 1.442695, %v983_v62 }
 0x39a   : > { %v2238_v1 = vpop.eup %2237  ;;  %2243 = vpow2.f32 %v986_v63 }
 0x39b   : > { %v868_v2 = vsel %vm855_vm3, %v2238_v1, 0.0 }
 0x39c   : > { %v2240_v5 = vpop.eup %2239  ;;  %869 = vadd.xlane.f32.xlu0 %v868_v2 }
 0x39d   : > { %v871_v6 = vsel %vm855_vm3, %v2240_v5, 0.0 }
 0x39e   : > { %872 = vadd.xlane.f32.xlu1 %v871_v6 }
 0x3a2   : > { %v2242_v7 = vpop.eup %2241 }
 0x3a3   : > { %v988_v8 = vsel %vm855_vm3, %v2242_v7, 0.0 }
 0x3a4   : > { %v2244_v9 = vpop.eup %2243  ;;  %989 = vadd.xlane.f32.xlu0 %v988_v8 }
 0x3a5   : > { %v991_v10 = vsel %vm855_vm3, %v2244_v9, 0.0 }
 0x3a6   : > { %992 = vadd.xlane.f32.xlu1 %v991_v10 }
 0x3b7   : > { %1147 = vrot.lane.b32.xlu1 %v2926_v17, %s2542_s16  ;;  %s3213_s16 = sld [smem:[#allocation27_spill]] }
 0x3ba   : > { %1000 = vrot.lane.b32.xlu0 %v2971_v51, %s2539_s20  ;;  %s2544_s20 = smov 104  }
 0x3bb   : > { %1145 = vrot.lane.b32.xlu1 %v2926_v17, %s2543_s15 }
 0x429   : > { %v870_v11 = vpop.xlane.xlu0 %869 }
 0x42a   : > { %2245 = vrcp.f32 %v870_v11 }
 0x42b   : > { %v873_v12 = vpop.xlane.xlu1 %872 }
 0x42c   : > { %2247 = vrcp.f32 %v873_v12 }
 0x431   : > { %v990_v13 = vpop.xlane.xlu0 %989 }
 0x432   : > { %2249 = vrcp.f32 %v990_v13 }
 0x433   : > { %v993_v14 = vpop.xlane.xlu1 %992 }
 0x434   : > { %v2246_v15 = vpop.eup %2245  ;;  %2251 = vrcp.f32 %v993_v14 }
 0x435   : > { %v876_v18 = vmul.f32 %v2246_v15, %v2238_v1  ;;  %v1001_v20 = vpop.permute.xlu0 %1000 }
 0x436   : > { %v2248_v16 = vpop.eup %2247 }
 0x437   : > { %v877_v19 = vmul.f32 %v2248_v16, %v2240_v5  ;;  %v1148_v40 = vpop.permute.xlu1 %1147 }
 0x438   : > { %v1153_v44 = vsel %vm807_vm2, %v1148_v40, 0 }
 0x439   : > { %v878_v21 = vpack.c.bf16 %v877_v19, %v876_v18 }
 0x43b   : > { %2032 = vmatmul.mubr.msk.bf16.vlgmr.msra.gmra.mrb[4].mxu1 %vm855_vm3, %v878_v21  ;;  %v1146_v45 = vpop.permute.xlu1 %1145 }
 0x43c   : > { %v2250_v22 = vpop.eup %2249  ;;  %2042 = vmatpush3.bf16.msra.mxu1 %v1001_v20  ;;  %2043 = vmatprep.mubr.msk.bf16.mxu1 %vm2538_vm0, %v2537_v0 }
 0x43d   : > { %2053 = vmatprep.subr.bf16.mxu1 %v2537_v0  ;;  %v996_v24 = vmul.f32 %v2250_v22, %v2242_v7 }
 0x43e   : > { %v2252_v23 = vpop.eup %2251 }
 0x43f   : > { %v997_v25 = vmul.f32 %v2252_v23, %v2244_v9 }
 0x441   : > { %v998_v27 = vpack.c.bf16 %v997_v25, %v996_v24  ;;  %v1268_v25 = vld [vmem:[#allocation8 + $0x8] sm:$0xf] }
 0x443   : > { %2044 = vmatmul.mubr.msk.bf16.vlgmr.msra.gmra.mrb[8].mxu1 %vm855_vm3, %v998_v27  ;;  %v1273_v27 = vsel %vm1053_vm4, %v1268_v25, 0 }
 0x444   : > { %2055 = vmatprep.mubr.msk.bf16.mxu1 %vm2538_vm0, %v2537_v0  ;;  %2054 = vmatpush3.bf16.msra.mxu1 %v1102_v30 }
 0x445   : > { %2065 = vmatprep.subr.bf16.mxu1 %v2537_v0 }
 0x50e   : > { %v916_v33 = vpop.f32.mrb[4].mxu1 }
 0x50f   : > { %v2033_v34 = vpop.f32.mrb[5].mxu1 }
 0x510   : > { %v919_v35 = vpop.f32.mrb[6].mxu1 }
 0x511   : > { %v923_v36 = vpack.c.bf16 %v919_v35, %v916_v33  ;;  %v2034_v37 = vpop.f32.mrb[7].mxu1 }
 0x513   : > { %2056 = vmatmul.mubr.msk.bf16.vlgmr.msra.gmra.mrb[12].mxu1 %vm807_vm2, %v923_v36 }
 0x514   : > { %2067 = vmatprep.mubr.msk.bf16.mxu1 %vm2538_vm0, %v2537_v0 }
 0x516   : > { %v1040_v38 = vpop.f32.mrb[8].mxu1 }
 0x517   : > { %v2045_v39 = vpop.f32.mrb[9].mxu1 }
 0x518   : > { %v1043_v41 = vpop.f32.mrb[10].mxu1 }
 0x519   : > { %v1047_v42 = vpack.c.bf16 %v1043_v41, %v1040_v38  ;;  %v2046_v43 = vpop.f32.mrb[11].mxu1 }
 0x51b   : > { %2050 = vmatmul.mubr.msk.bf16.vlgmr.msra.gmra.mrb[12].mxu0 %vm807_vm2, %v1047_v42 }
 0x51c   : > { %2060 = vmatpush3.bf16.xpose.msra.mxu0 %v1153_v44  ;;  %2061 = vmatprep.mubr.msk.bf16.mxu0 %vm2538_vm0, %v2537_v0 }
 0x51d   : > { %2071 = vmatprep.subr.bf16.mxu0 %v2537_v0 }
 0x523   : > { %2062 = vmatmul.mubr.msk.bf16.vlgmr.msra.gmra.mrb[16].mxu0 %vm807_vm2, %v1146_v45 }
 0x524   : > { %2073 = vmatprep.mubr.msk.bf16.mxu0 %vm2538_vm0, %v2537_v0  ;;  %2072 = vmatpush3.bf16.msra.mxu0 %v1273_v27 }
 0x525   : > { %2083 = vmatprep.subr.bf16.mxu0 %v2537_v0 }
 0x5e6   : > { %v1138_v46 = vpop.f32.mrb[12].mxu1 }
 0x5e7   : > { %v2057_v47 = vpop.f32.mrb[13].mxu1 }
 0x5e8   : > { %v1141_v48 = vpop.f32.mrb[14].mxu1 }
 0x5e9   : > { %v2058_v49 = vpop.f32.mrb[15].mxu1 }
 0x5ee   : > { %v1091_v50 = vpop.f32.mrb[12].mxu0 }
 0x5ef   : > { %v3006_v52 = vadd.f32 %v1138_v46, %v1091_v50  ;;  %v2051_v53 = vpop.f32.mrb[13].mxu0  ;;  %v1441_v50 = vld [vmem:[#allocation8 + $0xc] sm:$0xf] }
 0x5f0   : > { %v1094_v54 = vpop.f32.mrb[14].mxu0  ;;  %v1446_v53 = vsel %vm1053_vm4, %v1441_v50, 0 }
 0x5f1   : > { %v3008_v55 = vadd.f32 %v1141_v48, %v1094_v54  ;;  %v2052_v56 = vpop.f32.mrb[15].mxu0 }
 0x5f6   : > { %v1189_v57 = vpop.f32.mrb[16].mxu0 }
 0x5f7   : > { %v1190_v58 = vadd.f32 %v1189_v57, %v2953_v26  ;;  %v2063_v59 = vpop.f32.mrb[17].mxu0 }
 0x5f8   : > { %v1192_v60 = vpop.f32.mrb[18].mxu0 }
 0x5f9   : > { %v1193_v61 = vadd.f32 %v1192_v60, %v2958_v28  ;;  %v2064_v62 = vpop.f32.mrb[19].mxu0  ;;  %v1196_v63 = vsel %vm855_vm3, %v1190_v58, -inf }
 0x5fa   : > { %1197 = vmax.xlane.f32.xlu0 %v1196_v63 }
 0x5fb   : > { %v1199_v1 = vsel %vm855_vm3, %v1193_v61, -inf }
 0x5fc   : > { %1200 = vmax.xlane.f32.xlu1 %v1199_v1 }
 0x60d   : > { %1219 = vrot.lane.b32.xlu1 %v2971_v51, %s2543_s15  ;;  %s3210_s15 = sld [smem:[#allocation23_spill]] }
 0x611   : > { %1318 = vrot.lane.b32.xlu1 %v2926_v17, %s2544_s20 }
 0x687   : > { %v1198_v2 = vpop.xlane.xlu0 %1197 }
 0x688   : > { %v1202_v5 = vsub.f32 %v1190_v58, %v1198_v2 }
 0x689   : > { %v1201_v6 = vpop.xlane.xlu1 %1200 }
 0x68a   : > { %v1204_v7 = vmul.f32 1.442695, %v1202_v5  ;;  %v1203_v8 = vsub.f32 %v1193_v61, %v1201_v6 }
 0x68c   : > { %2253 = vpow2.f32 %v1204_v7  ;;  %v1206_v9 = vmul.f32 1.442695, %v1203_v8 }
 0x68d   : > { %v1220_v10 = vpop.permute.xlu1 %1219 }
 0x68e   : > { %2255 = vpow2.f32 %v1206_v9  ;;  %2066 = vmatpush3.bf16.msra.mxu1 %v1220_v10 }
 0x68f   : > { %2077 = vmatprep.subr.bf16.mxu1 %v2537_v0 }
 0x696   : > { %v2254_v11 = vpop.eup %2253 }
 0x697   : > { %v1208_v12 = vsel %vm855_vm3, %v2254_v11, 0.0 }
 0x698   : > { %v2256_v13 = vpop.eup %2255  ;;  %1209 = vadd.xlane.f32.xlu0 %v1208_v12 }
 0x699   : > { %v1211_v14 = vsel %vm855_vm3, %v2256_v13, 0.0 }
 0x69c   : > { %1212 = vadd.xlane.f32.xlu0 %v1211_v14 }
 0x6b2   : > { %1320 = vrot.lane.b32.xlu0 %v2926_v17, %s2545_s23  ;;  %v1319_v17 = vpop.permute.xlu1 %1318 }
 0x725   : > { %v1210_v15 = vpop.xlane.xlu0 %1209 }
 0x726   : > { %2257 = vrcp.f32 %v1210_v15 }
 0x729   : > { %v1213_v16 = vpop.xlane.xlu0 %1212 }
 0x72a   : > { %2259 = vrcp.f32 %v1213_v16 }
 0x72d   : > { %v1321_v22 = vpop.permute.xlu0 %1320 }
 0x72e   : > { %v1326_v24 = vsel %vm807_vm2, %v1321_v22, 0 }
 0x730   : > { %v2258_v18 = vpop.eup %2257 }
 0x731   : > { %v1216_v20 = vmul.f32 %v2258_v18, %v2254_v11  ;;  %v1946_v11 = vld [vmem:[#allocation10] ss:$0 sm:$0xff] }
 0x734   : > { %v2260_v19 = vpop.eup %2259 }
 0x735   : > { %v1217_v21 = vmul.f32 %v2260_v19, %v2256_v13 }
 0x737   : > { %v1218_v23 = vpack.c.bf16 %v1217_v21, %v1216_v20 }
 0x739   : > { %2068 = vmatmul.mubr.msk.bf16.vlgmr.msra.gmra.mrb[16].mxu1 %vm855_vm3, %v1218_v23 }
 0x73a   : > { %2078 = vmatpush3.bf16.xpose.msra.mxu1 %v1326_v24  ;;  %2079 = vmatprep.mubr.msk.bf16.mxu1 %vm2538_vm0, %v2537_v0 }
 0x73b   : > { %2089 = vmatprep.subr.bf16.mxu1 %v2537_v0 }
 0x741   : > { %2080 = vmatmul.mubr.msk.bf16.vlgmr.msra.gmra.mrb[20].mxu1 %vm807_vm2, %v1319_v17 }
 0x742   : > { %2091 = vmatprep.mubr.msk.bf16.mxu1 %vm2538_vm0, %v2537_v0  ;;  %2090 = vmatpush3.bf16.msra.mxu1 %v1446_v53  ;;  %v1948_v53 = vld [vmem:[%s3209_s28] ss:$0 sm:$0xff]  ;;  %s3211_s28 = sld [smem:[#allocation25_spill]] }
 0x743   : > { %2103 = vmatprep.subr.bf16.mxu1 %v2537_v0 }
 0x80c   : > { %v1259_v29 = vpop.f32.mrb[16].mxu1 }
 0x80d   : > { %v2069_v30 = vpop.f32.mrb[17].mxu1 }
 0x80e   : > { %v1262_v31 = vpop.f32.mrb[18].mxu1  ;;  %v2234_v30 = vld [vmem:[%s3208_s17 + $0x8] sm:$0xff]  }
 0x80f   : > { %v1266_v32 = vpack.c.bf16 %v1262_v31, %v1259_v29  ;;  %v2070_v33 = vpop.f32.mrb[19].mxu1  ;;  %v2233_v29 = vld [vmem:[%s3208_s17] sm:$0xff]  }
 0x811   : > { %2074 = vmatmul.mubr.msk.bf16.vlgmr.msra.gmra.mrb[20].mxu0 %vm807_vm2, %v1266_v32 }
 0x812   : > { %2085 = vmatprep.mubr.msk.bf16.mxu0 %vm2538_vm0, %v2537_v0 }
 0x814   : > { %v1362_v34 = vpop.f32.mrb[20].mxu1 }
 0x815   : > { %v1363_v35 = vadd.f32 %v1362_v34, %v2953_v26  ;;  %v2081_v36 = vpop.f32.mrb[21].mxu1 }
 0x816   : > { %v1365_v37 = vpop.f32.mrb[22].mxu1 }
 0x817   : > { %v1366_v38 = vadd.f32 %v1365_v37, %v2958_v28  ;;  %v2082_v39 = vpop.f32.mrb[23].mxu1  ;;  %v1369_v40 = vsel %vm855_vm3, %v1363_v35, -inf }
 0x818   : > { %1370 = vmax.xlane.f32.xlu1 %v1369_v40 }
 0x819   : > { %v1372_v41 = vsel %vm855_vm3, %v1366_v38, -inf }
 0x81a   : > { %1373 = vmax.xlane.f32.xlu0 %v1372_v41 }
 0x8a5   : > { %v1371_v42 = vpop.xlane.xlu1 %1370 }
 0x8a6   : > { %v1375_v43 = vsub.f32 %v1363_v35, %v1371_v42 }
 0x8a7   : > { %v1374_v44 = vpop.xlane.xlu0 %1373 }
 0x8a8   : > { %v1377_v45 = vmul.f32 1.442695, %v1375_v43  ;;  %v1376_v46 = vsub.f32 %v1366_v38, %v1374_v44 }
 0x8aa   : > { %2261 = vpow2.f32 %v1377_v45  ;;  %v1379_v47 = vmul.f32 1.442695, %v1376_v46 }
 0x8ac   : > { %2263 = vpow2.f32 %v1379_v47 }
 0x8b4   : > { %v2262_v26 = vpop.eup %2261 }
 0x8b5   : > { %v1381_v48 = vsel %vm855_vm3, %v2262_v26, 0.0 }
 0x8b6   : > { %v2264_v49 = vpop.eup %2263  ;;  %1382 = vadd.xlane.f32.xlu0 %v1381_v48 }
 0x8b7   : > { %v1384_v28 = vsel %vm855_vm3, %v2264_v49, 0.0 }
 0x8b8   : > { %1385 = vadd.xlane.f32.xlu1 %v1384_v28 }
 0x8cc   : > { %1392 = vrot.lane.b32.xlu0 %v2971_v51, %s2544_s20  ;;  %s1968_s20 = sshll.u32 %s2660_s0, 8  ;;  %s2546_s0 = smov [#allocation13]  }
 0x8cd   : > { %s2451_s18 = sshll.u32 %s2546_s0, 4  ;;  %s2452_s18 = int_to_ptr.vmem [resolvable:$false] %s2451_s18 }
 0x8e4   : > { %v1309_v54 = vpop.f32.mrb[20].mxu0 }
 0x8e5   : > { %v1316_v56 = vadd.f32 %v1309_v54, %v3006_v52  ;;  %v2075_v57 = vpop.f32.mrb[21].mxu0 }
 0x8e6   : > { %v1312_v58 = vpop.f32.mrb[22].mxu0 }
 0x8e7   : > { %v1317_v59 = vadd.f32 %v1312_v58, %v3008_v55  ;;  %v2076_v60 = vpop.f32.mrb[23].mxu0 }
 0x8e8   : > { %v2236_v60 = vld [vmem:[%s3208_s17 + $0x18] sm:$0xff]  }
 0x943   : > { %v1383_v61 = vpop.xlane.xlu0 %1382 }
 0x944   : > { %2265 = vrcp.f32 %v1383_v61  ;;  %v1949_v61 = vld [vmem:[%s3210_s15] ss:$0 sm:$0xff]  ;;  %s650_s15 = scalar_lea.vmem [#allocation13], %s1917_s12 }
 0x945   : > { %v1386_v62 = vpop.xlane.xlu1 %1385  ;;  %s1772_s23 = sshll.u32 %s650_s15, 4  ;;  %s3111_s23 = int_to_ptr.vmem [resolvable:$true] %s1772_s23 }
 0x946   : > { %2267 = vrcp.f32 %v1386_v62  ;;  %s2447_s12 = scalar_lea.vmem %s3111_s23, 256  ;;  %p2454_p3 = scmp.lt.s32.totalorder %s3111_s23, %s2452_s18 }
 0x947   : > { %v1393_v63 = vpop.permute.xlu0 %1392  ;;  %p2448_p4 = scmp.ne.s32.totalorder %s3111_s23, %s2447_s12 }
 0x948   : > { %2084 = vmatpush3.bf16.msra.mxu0 %v1393_v63 }
 0x949   : > { %2095 = vmatprep.subr.bf16.mxu0 %v2537_v0  ;;  %p2449_p13 = pnand %p2448_p4, %p3215_p12 }
 0x94b   : > { %p2450_p1 = pneg %p2449_p13 }
 0x94e   : > { %v2266_v51 = vpop.eup %2265 }
 0x94f   : > { %v1389_v2 = vmul.f32 %v2266_v51, %v2262_v26  ;;  %v1947_v26 = vld [vmem:[#allocation11] ss:$0 sm:$0xff] }
 0x950   : > { %v2268_v1 = vpop.eup %2267 }
 0x951   : > { %v1390_v5 = vmul.f32 %v2268_v1, %v2264_v49 }
 0x953   : > { %v1391_v6 = vpack.c.bf16 %v1390_v5, %v1389_v2 }
 0x955   : > { %2086 = vmatmul.mubr.msk.bf16.vlgmr.msra.gmra.mrb[24].mxu0 %vm855_vm3, %v1391_v6 }
 0x956   : > { %2099 = vmatprep.mubr.msk.bf16.mxu0 %vm2538_vm0, %v2537_v0 }
 0xa28   : > { %v1432_v52 = vpop.f32.mrb[24].mxu0 }
 0xa29   : > { %v2087_v55 = vpop.f32.mrb[25].mxu0 }
 0xa2a   : > { %v1435_v7 = vpop.f32.mrb[26].mxu0 }
 0xa2b   : > { %v1439_v8 = vpack.c.bf16 %v1435_v7, %v1432_v52  ;;  %v2088_v9 = vpop.f32.mrb[27].mxu0 }
 0xa2d   : > { %2092 = vmatmul.mubr.msk.bf16.vlgmr.msra.gmra.mrb[24].mxu1 %vm807_vm2, %v1439_v8 }
 0xa2e   : > { %2111 = vmatprep.mubr.msk.bf16.mxu1 %vm2538_vm0, %v2537_v0  ;;  %2104 = vmatpush3.bf16.msra.mxu1 %v2233_v29 }
 0xa2f   : > { %2105 = vmatprep.subr.bf16.mxu1 %v2537_v0 }
 0xa32   : > { %2106 = vmatpush3.bf16.msra.mxu1 %v2234_v30 }
 0xa33   : > { %2107 = vmatprep.subr.bf16.mxu1 %v2537_v0 }
 0xb00   : > { %v1482_v10 = vpop.f32.mrb[24].mxu1 }
 0xb01   : > { %v1489_v12 = vadd.f32 %v1482_v10, %v1316_v56  ;;  %v2093_v13 = vpop.f32.mrb[25].mxu1 }
 0xb02   : > { %v1485_v14 = vpop.f32.mrb[26].mxu1 }
 0xb03   : > { %v1498_v15 = vadd.f32 %v1946_v11, %v1489_v12  ;;  %v1490_v16 = vadd.f32 %v1485_v14, %v1317_v59  ;;  %v2094_v18 = vpop.f32.mrb[27].mxu1  ;;  %v2235_v59 = vld [vmem:[%s3208_s17 + $0x10] sm:$0xff]  }
 0xb04   : > { %2108 = vmatpush3.bf16.msra.mxu1 %v2235_v59 }
 0xb05   : > { %v1500_v19 = vadd.f32 %v1498_v15, %v2912_v3  ;;  %v1499_v20 = vadd.f32 %v1946_v11, %v1490_v16  ;;  %v2231_v3 = vld [vmem:[%s3167_s11] sm:$0xff]   ;;  %2109 = vmatprep.subr.bf16.mxu1 %v2537_v0 }
 0xb06   : > { %2096 = vmatpush3.bf16.msra.mxu0 %v2231_v3 }
 0xb07   : > { %v1501_v21 = vadd.f32 %v1499_v20, %v2914_v4  ;;  %v1502_v22 = vsel %vm690_vm1, %v1500_v19, 0.0  ;;  %v1511_v24 = vmul.f32 %v1500_v19, %v1500_v19  ;;  %v2232_v4 = vld [vmem:[%s3167_s11 + $0x8] sm:$0xff]   ;;  %2097 = vmatprep.subr.bf16.mxu0 %v2537_v0  ;;  %v1953_v0 = vld [vmem:[%s3211_s28] ss:$0 sm:$0xff] }
 0xb08   : > { %1503 = vadd.xlane.f32.xlu1 %v1502_v22  ;;  %2110 = vmatpush3.bf16.msra.mxu1 %v2236_v60 }
 0xb09   : > { %v1505_v23 = vsel %vm690_vm1, %v1501_v21, 0.0  ;;  %v1513_v17 = vsel %vm690_vm1, %v1511_v24, 0.0  ;;  %v1512_v25 = vmul.f32 %v1501_v21, %v1501_v21 }
 0xb0a   : > { %2098 = vmatpush3.bf16.msra.mxu0 %v2232_v4 }
 0xb0b   : > { %v1516_v27 = vsel %vm690_vm1, %v1512_v25, 0.0 }
 0xb0c   : > { %1506 = vadd.xlane.f32.xlu1 %v1505_v23 }
 0xb10   : > { %1514 = vadd.xlane.f32.xlu1 %v1513_v17 }
 0xb14   : > { %1517 = vadd.xlane.f32.xlu1 %v1516_v27 }
 0xb95   : > { %v1504_v31 = vpop.xlane.xlu1 %1503 }
 0xb96   : > { %v1509_v33 = vmul.f32 0.03125, %v1504_v31 }
 0xb98   : > { %v1521_v35 = vmul.f32 %v1509_v33, %v1509_v33  ;;  %v1529_v45 = vsub.f32 %v1500_v19, %v1509_v33 }
 0xb99   : > { %v1507_v32 = vpop.xlane.xlu1 %1506 }
 0xb9a   : > { %v1510_v36 = vmul.f32 0.03125, %v1507_v32 }
 0xb9c   : > { %v1522_v40 = vmul.f32 %v1510_v36, %v1510_v36  ;;  %v1530_v48 = vsub.f32 %v1501_v21, %v1510_v36 }
 0xb9d   : > { %v1515_v34 = vpop.xlane.xlu1 %1514 }
 0xb9e   : > { %v1519_v37 = vmul.f32 0.03125, %v1515_v34 }
 0xba0   : > { %v1523_v38 = vsub.f32 %v1519_v37, %v1521_v35  ;;  %v1959_v37 = vld [vmem:[%s3212_s13] ss:$0 sm:$0xff]  ;;  %s3109_s13 = scalar_lea.hbm %s3214_s3, %s1968_s20 }
 0xba1   : > { %v1518_v39 = vpop.xlane.xlu1 %1517 }
 0xba2   : > { %v1525_v41 = vadd.f32 1e-05, %v1523_v38  ;;  %v1520_v42 = vmul.f32 0.03125, %v1518_v39  ;;  %v1960_v39 = vld [vmem:[%s3213_s16] ss:$0 sm:$0xff]  ;;  %s2453_s16 = scalar_lea.vmem %s2452_s18, 512 }
 0xba3   : > { %p2455_p2 = scmp.lt.s32.totalorder %s2453_s16, %s2447_s12 }
 0xba4   : > { %2269 = vrsqrt.f32 %v1525_v41  ;;  %v1524_v43 = vsub.f32 %v1520_v42, %v1522_v40 }
 0xba5   : > { %p2456_p8 = por %p2455_p2, %p2454_p3 }
 0xba6   : > { %v1526_v44 = vadd.f32 1e-05, %v1524_v43 }
 0xba7   : > { %p2457_p6 = pnand %p2456_p8, %p2450_p1 }
 0xba8   : > { %2271 = vrsqrt.f32 %v1526_v44 }
 0xbae   : > { %v2270_v46 = vpop.eup %2269 }
 0xbaf   : > { %v1531_v47 = vmul.f32 %v2270_v46, %v1529_v45 }
 0xbb1   : > { %v1540_v50 = vmul.f32 %v1947_v26, %v1531_v47 }
 0xbb2   : > { %v2272_v49 = vpop.eup %2271 }
 0xbb3   : > { %v1532_v28 = vmul.f32 %v2272_v49, %v1530_v48  ;;  %v1549_v56 = vadd.f32 %v1948_v53, %v1540_v50 }
 0xbb5   : > { %v1541_v54 = vmul.f32 %v1947_v26, %v1532_v28 }
 0xbb7   : > { %v1550_v57 = vadd.f32 %v1948_v53, %v1541_v54 }
 0xbb9   : > { %v1551_v58 = vpack.c.bf16 %v1550_v57, %v1549_v56 }
 0xbbb   : > { %2100 = vmatmul.mubr.msk.bf16.vlgmr.msra.gmra.mrb[28].mxu0 %vm690_vm1, %v1551_v58 }
 0xc8e   : > { %v1612_v62 = vpop.f32.mrb[28].mxu0 }
 0xc8f   : > { %v1613_v63 = vadd.f32 %v1949_v61, %v1612_v62  ;;  %v2101_v51 = vpop.f32.mrb[29].mxu0 }
 0xc90   : > { %v1615_v1 = vpop.f32.mrb[30].mxu0 }
 0xc91   : > { %v1616_v2 = vadd.f32 %v1949_v61, %v1615_v1  ;;  %v2102_v5 = vpop.f32.mrb[31].mxu0  ;;  %v1619_v6 = vmax.f32 %v1613_v63, 0.0 }
 0xc93   : > { %v1620_v52 = vmax.f32 %v1616_v2, 0.0 }
 0xc95   : > { %v1621_v55 = vpack.c.bf16 %v1620_v52, %v1619_v6 }
 0xc97   : > { %2112 = vmatmul.mubr.msk.bf16.vlgmr.msra.gmra.mrb[28].mxu1 %vm1661_vm5, %v1621_v55 }
 0xd6a   : > { %v1699_v7 = vpop.f32.mrb[28].mxu1 }
 0xd6b   : > { %v1700_v8 = vadd.f32 %v1953_v0, %v1699_v7  ;;  %v2113_v9 = vpop.f32.mrb[29].mxu1 }
 0xd6c   : > { %v1702_v10 = vpop.f32.mrb[30].mxu1 }
 0xd6d   : > { %v1706_v11 = vadd.f32 %v1700_v8, %v1549_v56  ;;  %v1703_v12 = vadd.f32 %v1953_v0, %v1702_v10  ;;  %v2114_v13 = vpop.f32.mrb[31].mxu1 }
 0xd6f   : > { %v1707_v14 = vadd.f32 %v1703_v12, %v1550_v57  ;;  %v1708_v15 = vsel %vm690_vm1, %v1706_v11, 0.0  ;;  %v1716_v16 = vmul.f32 %v1706_v11, %v1706_v11 }
 0xd70   : > { %1709 = vadd.xlane.f32.xlu1 %v1708_v15 }
 0xd71   : > { %v1718_v18 = vsel %vm690_vm1, %v1716_v16, 0.0  ;;  %v1711_v19 = vsel %vm690_vm1, %v1707_v14, 0.0  ;;  %v1717_v20 = vmul.f32 %v1707_v14, %v1707_v14 }
 0xd72   : > { %1719 = vadd.xlane.f32.xlu0 %v1718_v18 }
 0xd73   : > { %v1721_v21 = vsel %vm690_vm1, %v1717_v20, 0.0 }
 0xd74   : > { %1712 = vadd.xlane.f32.xlu1 %v1711_v19 }
 0xd78   : > { %1722 = vadd.xlane.f32.xlu1 %v1721_v21 }
 0xdfd   : > { %v1710_v22 = vpop.xlane.xlu1 %1709 }
 0xdfe   : > { %v1714_v23 = vmul.f32 0.03125, %v1710_v22 }
 0xdff   : > { %v1720_v24 = vpop.xlane.xlu0 %1719 }
 0xe00   : > { %v1726_v17 = vmul.f32 %v1714_v23, %v1714_v23  ;;  %v1724_v25 = vmul.f32 0.03125, %v1720_v24  ;;  %v1734_v35 = vsub.f32 %v1706_v11, %v1714_v23 }
 0xe01   : > { %v1713_v27 = vpop.xlane.xlu1 %1712 }
 0xe02   : > { %v1728_v3 = vsub.f32 %v1724_v25, %v1726_v17  ;;  %v1715_v4 = vmul.f32 0.03125, %v1713_v27 }
 0xe04   : > { %v1730_v29 = vadd.f32 1e-05, %v1728_v3  ;;  %v1727_v31 = vmul.f32 %v1715_v4, %v1715_v4  ;;  %v1735_v42 = vsub.f32 %v1707_v14, %v1715_v4 }
 0xe05   : > { %v1723_v30 = vpop.xlane.xlu1 %1722 }
 0xe06   : > { %2273 = vrsqrt.f32 %v1730_v29  ;;  %v1725_v32 = vmul.f32 0.03125, %v1723_v30 }
 0xe08   : > { %v1729_v33 = vsub.f32 %v1725_v32, %v1727_v31 }
 0xe0a   : > { %v1731_v34 = vadd.f32 1e-05, %v1729_v33 }
 0xe0c   : > { %2275 = vrsqrt.f32 %v1731_v34 }
 0xe10   : > { %v2274_v36 = vpop.eup %2273 }
 0xe11   : > { %v1736_v38 = vmul.f32 %v2274_v36, %v1734_v35 }
 0xe13   : > { %v1745_v40 = vmul.f32 %v1959_v37, %v1736_v38 }
 0xe15   : > { %v1754_v41 = vadd.f32 %v1960_v39, %v1745_v40 }
 0xe16   : > { %v2276_v43 = vpop.eup %2275 }
 0xe17   : > { %v1737_v44 = vmul.f32 %v2276_v43, %v1735_v42  ;;  %1756 = vst.msk [vmem:[%s650_s15] sm:$0xff] %vm690_vm1, %v1754_v41 }
 0xe19   : > { %v1746_v45 = vmul.f32 %v1959_v37, %v1737_v44 }
 0xe1b   : > { %v1755_v46 = vadd.f32 %v1960_v39, %v1746_v45 }
 0xe1d   : > { %1757 = vst.msk [vmem:[%s650_s15 + $0x8] sm:$0xff] %vm690_vm1, %v1755_v46 }
 0xe1e   : > { %2460 = shalt.err (!%p2457_p6)
}
 0xe1f   : > { %s2461_s15 = scalar_lea.hbm %s3109_s13, 256  ;;  %s2465_s30 = scalar_lea.hbm %s3214_s3, 512 }
 0xe20   : > { %p2462_p10 = scmp.ne.s32.totalorder %s3109_s13, %s2461_s15  ;;  %p2466_p5 = scmp.lt.u32.totalorder %s3109_s13, %s3214_s3 }
 0xe21   : > { %p2467_p9 = scmp.lt.u32.totalorder %s2465_s30, %s2461_s15  ;;  %p2469_p4 = scmp.lt.u32.totalorder %s2461_s15, %s3109_s13 }
 0xe22   : > { %p2463_p11 = pnand %p2462_p10, %p3215_p12 }
 0xe23   : > { %p2468_p7 = por %p2467_p9, %p2466_p5 }
 0xe24   : > { %p2464_p0 = pneg %p2463_p11 }
 0xe25   : > { %p2470_p13 = por %p2469_p4, %p2468_p7 }
 0xe27   : > { %p2471_p1 = pnand %p2470_p13, %p2464_p0 }
 0xe29   : > { %2474 = shalt.err (!%p2471_p1)
}
 0xe2a   : > { %s2547_s12 = smov 128   ;;  %s2548_s16 = smov 8  }
 0xe2b   : > { %2137 = dma.vmem_to_hbm [thread:$0]  (%p3215_p12), %s3111_s23, 256, %s3109_s13, %s1759_s21, %s2547_s12, %s2547_s12, %s2548_s16  }
 0xe2c PF: > { %s1787_s20 = sand.u32 1, %s2513_s24   ;;  %p3216_p3 = scmp.ne.s32.totalorder %s3197_s14, 0 }
 0xe2d   : > { %p3217_p2 = scmp.ge.s32.totalorder %s2525_s27, 2  ;;  %s1788_s15 = scalar_lea.sflag [#allocation4], %s1787_s20 }
 0xe2f   : > { %p2160_p8 = pnand %p3217_p2, %p3216_p3 }
 0xe31   : > { %2508 = dma.done.wait (!%p2160_p8), %s1788_s15, 256  }
 0xe32   : > { %2510 = vsyncadd (!%p2160_p8), %s1788_s15, 4294967040  ;;  %p33_p6 = scmp.ge.s32.totalorder %s2806_s1, 4   ;;  %s3218_s24 = smov %s2517_s25 }
 0xe33   : > { %s3219_s25 = smov %s2521_s26  ;;  %s3220_s26 = smov %s2818_s10 }
 0xe34   : > { %s3221_s27 = smov %s2806_s1  ;;  %35 = sbr.rel (!%p33_p6) target bundleno = 19 (0x13), region = 159 }
 0xe3b   :  { %1793 = vsyncpa [#allocation3], 1 }
 0xe3c   :  { %1795 = vsyncpa [#allocation3 + $0x1], 1 }
 0xe3d   :  { %1796 = vsyncpa [#allocation6], 1 }
 0xe3e   :  { %1797 = vsyncpa [#allocation9], 1 }
 0xe3f   :  { %1798 = vsyncpa [#allocation12], 1 }
 0xe40   :  { %1799 = vsyncpa [#allocation4], 1 }
 0xe41   :  { %1801 = vsyncpa [#allocation4 + $0x1], 1 }

</bundles_post_ra>
